<compile_context>
chip_gen: v7x
topology: tpu7x:2x2x1
jax: 0.10.0
libtpu: 0.0.40
codegen_flags: <defaults>
</compile_context>

<pallas_src>
import jax
import jax.numpy as jnp
from jax import lax
from jax.experimental import pallas as pl
from jax.experimental.pallas import tpu as pltpu

OUT_CH = 64
LRELU_SLOPE = 0.2
BN_EPS = 1e-5


def _leaky(x):
    return jnp.where(x > 0.0, x, LRELU_SLOPE * x)


# ---------------------------------------------------------------------------
# Fused kernel: conv1(+BN1+LReLU) -> conv2(+BN2) -> max over k -> +b2 -> LReLU
# ---------------------------------------------------------------------------
def _mlp3_kernel(g_ref, xc_ref, w1a_ref, w1c_ref, b1_ref, w2_ref, b2_ref, out_ref):
    # g_ref : (TB, C, K*N)  gathered neighbors, channels-first, neighbor(j)-major
    # xc_ref: (TB, C, N)    center points (j-independent part of the graph feature)
    # w1a   : (64, C)       BN1-folded conv1 weight acting on the gathered neighbors
    # w1c   : (64, C)       BN1-folded conv1 weight acting on the centers (w1b - w1a)
    # b1,b2 : (64, 1)       folded BN biases (broadcast along lanes)
    # w2    : (64, 64)      BN2-scale-folded conv2 weight
    # out   : (TB, 64, N)
    TB, C, KN = g_ref.shape
    N = xc_ref.shape[2]
    K = KN // N

    w1a = w1a_ref[...]
    w1c = w1c_ref[...]
    b1 = b1_ref[...]
    w2 = w2_ref[...]
    b2 = b2_ref[...]

    for b in range(TB):                                      # small static batch-tile unroll
        g = g_ref[b]                                         # (C, K*N)  lane-dense
        xc = xc_ref[b]                                       # (C, N)

        # conv1 (BN1 folded), via linearity of the 1x1 conv over cat(g - xc, xc)
        h1 = jnp.dot(w1a, g, preferred_element_type=jnp.float32)           # (64, K*N)
        corr = jnp.dot(w1c, xc, preferred_element_type=jnp.float32) + b1   # (64, N), j-indep.
        h1 = h1 + jnp.concatenate([corr] * K, axis=1)        # broadcast over neighbors (j-major)
        h1 = _leaky(h1)

        # conv2 (BN2 scale folded): one big MXU matmul over all K*N columns
        h2 = jnp.dot(w2, h1, preferred_element_type=jnp.float32)           # (64, K*N)

        # max over neighbors: running elementwise max on lane-dense (64, N) slices
        hmax = h2[:, 0:N]
        for j in range(1, K):
            hmax = jnp.maximum(hmax, h2[:, j * N:(j + 1) * N])

        # bias2 + LeakyReLU commute with the max (monotone) -> applied once on (64, N)
        out_ref[b] = _leaky(hmax + b2)


def _pick_tb(B, C, N, K, budget_bytes=6 << 20):
    # per-batch-element VMEM footprint (inputs + output + main f32 temporaries)
    per = 4 * (C * K * N + C * N + OUT_CH * N + 3 * OUT_CH * K * N)
    tb = max(1, min(B, budget_bytes // max(per, 1)))
    while B % tb:                                            # keep the grid exact
        tb -= 1
    return tb


# ---------------------------------------------------------------------------
# Forward pass (MLP3)
# ---------------------------------------------------------------------------
def mlp3_forward(x, idx,
                 conv1_w, bn1_g, bn1_b, bn1_m, bn1_v,
                 conv2_w, bn2_g, bn2_b, bn2_m, bn2_v):
    # x: (B, C, N) float32 with C = 9;  idx: (B, N, k) int32 neighbor indices
    B, C, N = x.shape
    K = idx.shape[-1]

    # Fold eval-mode BatchNorm into the conv weights (exact).
    # TODO(synk): BatchNorm2d is folded in eval mode (running stats); training-mode
    # batch statistics would need an extra cross-batch reduction pass.
    s1 = bn1_g / jnp.sqrt(bn1_v + BN_EPS)
    b1 = bn1_b - bn1_m * s1
    w1f = conv1_w * s1[:, None]                              # (64, 2C)
    w1a = w1f[:, :C]                                         # acts on gathered neighbors
    w1c = w1f[:, C:] - w1f[:, :C]                            # acts on (j-independent) centers
    s2 = bn2_g / jnp.sqrt(bn2_v + BN_EPS)
    b2 = bn2_b - bn2_m * s2
    w2f = conv2_w * s2[:, None]                              # (64, 64)

    # Channels-first, neighbor-major gather: g[b, c, j*N + n] = x[b, c, idx[b, n, j]]
    # TODO(synk): the data-dependent neighbor gather stays in XLA (no single clean
    # Pallas TPU gather primitive); everything downstream is fused in one kernel.
    idx_jn = jnp.swapaxes(idx, 1, 2).reshape(B, 1, K * N)
    g = jnp.take_along_axis(x, jnp.broadcast_to(idx_jn, (B, C, K * N)), axis=2)

    TB = _pick_tb(B, C, N, K)
    grid = (B // TB,)

    out = pl.pallas_call(
        _mlp3_kernel,
        out_shape=jax.ShapeDtypeStruct((B, OUT_CH, N), jnp.float32),
        grid=grid,
        in_specs=[
            pl.BlockSpec((TB, C, K * N), lambda i: (i, 0, 0)),
            pl.BlockSpec((TB, C, N), lambda i: (i, 0, 0)),
            pl.BlockSpec((OUT_CH, C), lambda i: (0, 0)),
            pl.BlockSpec((OUT_CH, C), lambda i: (0, 0)),
            pl.BlockSpec((OUT_CH, 1), lambda i: (0, 0)),
            pl.BlockSpec((OUT_CH, OUT_CH), lambda i: (0, 0)),
            pl.BlockSpec((OUT_CH, 1), lambda i: (0, 0)),
        ],
        out_specs=pl.BlockSpec((TB, OUT_CH, N), lambda i: (i, 0, 0)),
        compiler_params=pltpu.CompilerParams(dimension_semantics=("parallel",)),
    )(g, x, w1a, w1c, b1[:, None], w2f, b2[:, None])
    return out                                               # (B, 64, N), as in PyTorch


# ---------------------------------------------------------------------------
# Pure-JAX reference (mirrors the torch module, eval-mode BN)
# ---------------------------------------------------------------------------
def mlp3_reference(x, idx,
                   conv1_w, bn1_g, bn1_b, bn1_m, bn1_v,
                   conv2_w, bn2_g, bn2_b, bn2_m, bn2_v):
    B, C, N = x.shape
    xt = jnp.transpose(x, (0, 2, 1))                         # (B, N, C)
    feat = jax.vmap(lambda xb, ib: xb[ib])(xt, idx)          # (B, N, k, C)
    center = xt[:, :, None, :]
    feat = jnp.concatenate([feat - center,
                            jnp.broadcast_to(center, feat.shape)], axis=-1)  # (B,N,k,2C)

    def block(h, w, g_, b_, m_, v_):
        h = jnp.einsum('bnkc,oc->bnko', h, w, precision=lax.Precision.HIGHEST)
        s = g_ / jnp.sqrt(v_ + BN_EPS)
        h = h * s + (b_ - m_ * s)
        return jnp.where(h > 0.0, h, LRELU_SLOPE * h)

    h = block(feat, conv1_w, bn1_g, bn1_b, bn1_m, bn1_v)     # (B, N, k, 64)
    h = block(h, conv2_w, bn2_g, bn2_b, bn2_m, bn2_v)        # (B, N, k, 64)
    h = jnp.max(h, axis=2)                                   # max over k -> (B, N, 64)
    return jnp.transpose(h, (0, 2, 1))                       # (B, 64, N)


if __name__ == "__main__":
    key = jax.random.PRNGKey(0)
    B, C, N, K = 2, 9, 16, 8                                 # conv1 in_channels = 2*C = 18
    ks = jax.random.split(key, 12)

    x = jax.random.normal(ks[0], (B, C, N), dtype=jnp.float32)
    idx = jax.random.randint(ks[1], (B, N, K), 0, N, dtype=jnp.int32)

    conv1_w = 0.2 * jax.random.normal(ks[2], (OUT_CH, 2 * C), dtype=jnp.float32)
    bn1_g = 1.0 + 0.1 * jax.random.normal(ks[3], (OUT_CH,), jnp.float32)
    bn1_b = 0.1 * jax.random.normal(ks[4], (OUT_CH,), jnp.float32)
    bn1_m = 0.1 * jax.random.normal(ks[5], (OUT_CH,), jnp.float32)
    bn1_v = jax.random.uniform(ks[6], (OUT_CH,), jnp.float32, minval=0.5, maxval=1.5)

    conv2_w = 0.2 * jax.random.normal(ks[7], (OUT_CH, OUT_CH), dtype=jnp.float32)
    bn2_g = 1.0 + 0.1 * jax.random.normal(ks[8], (OUT_CH,), jnp.float32)
    bn2_b = 0.1 * jax.random.normal(ks[9], (OUT_CH,), jnp.float32)
    bn2_m = 0.1 * jax.random.normal(ks[10], (OUT_CH,), jnp.float32)
    bn2_v = jax.random.uniform(ks[11], (OUT_CH,), jnp.float32, minval=0.5, maxval=1.5)

    out = jax.jit(mlp3_forward)(x, idx, conv1_w, bn1_g, bn1_b, bn1_m, bn1_v,
                                conv2_w, bn2_g, bn2_b, bn2_m, bn2_v)
    out = jax.block_until_ready(out)

    ref = mlp3_reference(x, idx, conv1_w, bn1_g, bn1_b, bn1_m, bn1_v,
                         conv2_w, bn2_g, bn2_b, bn2_m, bn2_v)
    assert out.shape == (B, OUT_CH, N), out.shape
    err = float(jnp.max(jnp.abs(out - ref)))
    assert jnp.allclose(out, ref, atol=2e-4, rtol=2e-4), f"max abs err = {err}"
    print("KERNEL_OK")
</pallas_src>

<mosaic_0001>
module attributes {stable_mosaic.version = 11 : i64} {
  func.func @_mlp3_kernel(%arg0: i32, %arg1: memref<2x9x128xf32, #tpu.memory_space<vmem>>, %arg2: memref<2x9x16xf32, #tpu.memory_space<vmem>>, %arg3: memref<64x9xf32, #tpu.memory_space<vmem>>, %arg4: memref<64x9xf32, #tpu.memory_space<vmem>>, %arg5: memref<64x1xf32, #tpu.memory_space<vmem>>, %arg6: memref<64x64xf32, #tpu.memory_space<vmem>>, %arg7: memref<64x1xf32, #tpu.memory_space<vmem>>, %arg8: memref<2x64x16xf32, #tpu.memory_space<vmem>>) attributes {dimension_semantics = [#tpu.dimension_semantics<parallel>], iteration_bounds = array<i64: 1>, scalar_prefetch = 0 : i64, scratch_operands = 0 : i64, tpu.core_type = #tpu.core_type<tc>, window_params = [{transform_indices = @transform_0, window_bounds = array<i64: 2, 9, 128>}, {transform_indices = @transform_1, window_bounds = array<i64: 2, 9, 16>}, {pipeline_mode = #tpu.pipeline_mode<synchronous>, transform_indices = @transform_2, window_bounds = array<i64: 64, 9>}, {pipeline_mode = #tpu.pipeline_mode<synchronous>, transform_indices = @transform_3, window_bounds = array<i64: 64, 9>}, {pipeline_mode = #tpu.pipeline_mode<synchronous>, transform_indices = @transform_4, window_bounds = array<i64: 64, 1>}, {pipeline_mode = #tpu.pipeline_mode<synchronous>, transform_indices = @transform_5, window_bounds = array<i64: 64, 64>}, {pipeline_mode = #tpu.pipeline_mode<synchronous>, transform_indices = @transform_6, window_bounds = array<i64: 64, 1>}, {transform_indices = @transform_7, window_bounds = array<i64: 2, 64, 16>}]} {
    %c0 = arith.constant 0 : index
    %c0_0 = arith.constant 0 : index
    %0 = vector.load %arg3[%c0, %c0_0] : memref<64x9xf32, #tpu.memory_space<vmem>>, vector<64x9xf32>
    %c0_1 = arith.constant 0 : index
    %c0_2 = arith.constant 0 : index
    %1 = vector.load %arg4[%c0_1, %c0_2] : memref<64x9xf32, #tpu.memory_space<vmem>>, vector<64x9xf32>
    %c0_3 = arith.constant 0 : index
    %c0_4 = arith.constant 0 : index
    %2 = vector.load %arg5[%c0_3, %c0_4] : memref<64x1xf32, #tpu.memory_space<vmem>>, vector<64x1xf32>
    %c0_5 = arith.constant 0 : index
    %c0_6 = arith.constant 0 : index
    %3 = vector.load %arg6[%c0_5, %c0_6] : memref<64x64xf32, #tpu.memory_space<vmem>>, vector<64x64xf32>
    %c0_7 = arith.constant 0 : index
    %c0_8 = arith.constant 0 : index
    %4 = vector.load %arg7[%c0_7, %c0_8] : memref<64x1xf32, #tpu.memory_space<vmem>>, vector<64x1xf32>
    %c0_9 = arith.constant 0 : index
    %c0_10 = arith.constant 0 : index
    %c0_11 = arith.constant 0 : index
    %5 = vector.load %arg1[%c0_9, %c0_10, %c0_11] : memref<2x9x128xf32, #tpu.memory_space<vmem>>, vector<1x9x128xf32>
    %6 = vector.shape_cast %5 : vector<1x9x128xf32> to vector<9x128xf32>
    %c0_12 = arith.constant 0 : index
    %c0_13 = arith.constant 0 : index
    %c0_14 = arith.constant 0 : index
    %7 = vector.load %arg2[%c0_12, %c0_13, %c0_14] : memref<2x9x16xf32, #tpu.memory_space<vmem>>, vector<1x9x16xf32>
    %8 = vector.shape_cast %7 : vector<1x9x16xf32> to vector<9x16xf32>
    %cst = arith.constant dense<0.000000e+00> : vector<64x128xf32>
    %9 = tpu.matmul %0, %6, %cst {dimension_numbers = #tpu.dot_dimension_numbers<[1], [0], [0], [1], [0, 0, 1, 1], [], []>} : vector<64x9xf32>, vector<9x128xf32>, vector<64x128xf32> -> vector<64x128xf32>
    %cst_15 = arith.constant dense<0.000000e+00> : vector<64x16xf32>
    %10 = tpu.matmul %1, %8, %cst_15 {dimension_numbers = #tpu.dot_dimension_numbers<[1], [0], [0], [1], [0, 0, 1, 1], [], []>} : vector<64x9xf32>, vector<9x16xf32>, vector<64x16xf32> -> vector<64x16xf32>
    %11 = vector.broadcast %2 : vector<64x1xf32> to vector<64x16xf32>
    %12 = arith.addf %10, %11 : vector<64x16xf32>
    %13 = tpu.concatenate %12, %12, %12, %12, %12, %12, %12, %12 in 1 : vector<64x16xf32>, vector<64x16xf32>, vector<64x16xf32>, vector<64x16xf32>, vector<64x16xf32>, vector<64x16xf32>, vector<64x16xf32>, vector<64x16xf32> -> vector<64x128xf32>
    %14 = arith.addf %9, %13 : vector<64x128xf32>
    %cst_16 = arith.constant 0.000000e+00 : f32
    %15 = vector.broadcast %cst_16 : f32 to vector<64x128xf32>
    %16 = arith.cmpf ogt, %14, %15 : vector<64x128xf32>
    %cst_17 = arith.constant 2.000000e-01 : f32
    %17 = vector.broadcast %cst_17 : f32 to vector<64x128xf32>
    %18 = arith.mulf %17, %14 : vector<64x128xf32>
    %19 = arith.select %16, %14, %18 : vector<64x128xi1>, vector<64x128xf32>
    %cst_18 = arith.constant dense<0.000000e+00> : vector<64x128xf32>
    %20 = tpu.matmul %3, %19, %cst_18 {dimension_numbers = #tpu.dot_dimension_numbers<[1], [0], [0], [1], [0, 0, 1, 1], [], []>} : vector<64x64xf32>, vector<64x128xf32>, vector<64x128xf32> -> vector<64x128xf32>
    %21 = vector.extract_strided_slice %20 {offsets = [0, 0], sizes = [64, 16], strides = [1, 1]} : vector<64x128xf32> to vector<64x16xf32>
    %22 = vector.extract_strided_slice %20 {offsets = [0, 16], sizes = [64, 16], strides = [1, 1]} : vector<64x128xf32> to vector<64x16xf32>
    %23 = arith.maximumf %21, %22 : vector<64x16xf32>
    %24 = vector.extract_strided_slice %20 {offsets = [0, 32], sizes = [64, 16], strides = [1, 1]} : vector<64x128xf32> to vector<64x16xf32>
    %25 = arith.maximumf %23, %24 : vector<64x16xf32>
    %26 = vector.extract_strided_slice %20 {offsets = [0, 48], sizes = [64, 16], strides = [1, 1]} : vector<64x128xf32> to vector<64x16xf32>
    %27 = arith.maximumf %25, %26 : vector<64x16xf32>
    %28 = vector.extract_strided_slice %20 {offsets = [0, 64], sizes = [64, 16], strides = [1, 1]} : vector<64x128xf32> to vector<64x16xf32>
    %29 = arith.maximumf %27, %28 : vector<64x16xf32>
    %30 = vector.extract_strided_slice %20 {offsets = [0, 80], sizes = [64, 16], strides = [1, 1]} : vector<64x128xf32> to vector<64x16xf32>
    %31 = arith.maximumf %29, %30 : vector<64x16xf32>
    %32 = vector.extract_strided_slice %20 {offsets = [0, 96], sizes = [64, 16], strides = [1, 1]} : vector<64x128xf32> to vector<64x16xf32>
    %33 = arith.maximumf %31, %32 : vector<64x16xf32>
    %34 = vector.extract_strided_slice %20 {offsets = [0, 112], sizes = [64, 16], strides = [1, 1]} : vector<64x128xf32> to vector<64x16xf32>
    %35 = arith.maximumf %33, %34 : vector<64x16xf32>
    %36 = vector.broadcast %4 : vector<64x1xf32> to vector<64x16xf32>
    %37 = arith.addf %35, %36 : vector<64x16xf32>
    %cst_19 = arith.constant 0.000000e+00 : f32
    %38 = vector.broadcast %cst_19 : f32 to vector<64x16xf32>
    %39 = arith.cmpf ogt, %37, %38 : vector<64x16xf32>
    %cst_20 = arith.constant 2.000000e-01 : f32
    %40 = vector.broadcast %cst_20 : f32 to vector<64x16xf32>
    %41 = arith.mulf %40, %37 : vector<64x16xf32>
    %42 = arith.select %39, %37, %41 : vector<64x16xi1>, vector<64x16xf32>
    %c0_21 = arith.constant 0 : index
    %c0_22 = arith.constant 0 : index
    %c0_23 = arith.constant 0 : index
    %43 = vector.load %arg8[%c0_21, %c0_22, %c0_23] : memref<2x64x16xf32, #tpu.memory_space<vmem>>, vector<1x64x16xf32>
    %44 = vector.shape_cast %43 : vector<1x64x16xf32> to vector<64x16xf32>
    %45 = vector.shape_cast %42 : vector<64x16xf32> to vector<1x64x16xf32>
    tpu.vector_store %arg8[%c0_21, %c0_22, %c0_23], %45 {strides = array<i32>} : memref<2x64x16xf32, #tpu.memory_space<vmem>>, vector<1x64x16xf32>,
    %c1 = arith.constant 1 : index
    %c0_24 = arith.constant 0 : index
    %c0_25 = arith.constant 0 : index
    %46 = vector.load %arg1[%c1, %c0_24, %c0_25] : memref<2x9x128xf32, #tpu.memory_space<vmem>>, vector<1x9x128xf32>
    %47 = vector.shape_cast %46 : vector<1x9x128xf32> to vector<9x128xf32>
    %c1_26 = arith.constant 1 : index
    %c0_27 = arith.constant 0 : index
    %c0_28 = arith.constant 0 : index
    %48 = vector.load %arg2[%c1_26, %c0_27, %c0_28] : memref<2x9x16xf32, #tpu.memory_space<vmem>>, vector<1x9x16xf32>
    %49 = vector.shape_cast %48 : vector<1x9x16xf32> to vector<9x16xf32>
    %cst_29 = arith.constant dense<0.000000e+00> : vector<64x128xf32>
    %50 = tpu.matmul %0, %47, %cst_29 {dimension_numbers = #tpu.dot_dimension_numbers<[1], [0], [0], [1], [0, 0, 1, 1], [], []>} : vector<64x9xf32>, vector<9x128xf32>, vector<64x128xf32> -> vector<64x128xf32>
    %cst_30 = arith.constant dense<0.000000e+00> : vector<64x16xf32>
    %51 = tpu.matmul %1, %49, %cst_30 {dimension_numbers = #tpu.dot_dimension_numbers<[1], [0], [0], [1], [0, 0, 1, 1], [], []>} : vector<64x9xf32>, vector<9x16xf32>, vector<64x16xf32> -> vector<64x16xf32>
    %52 = vector.broadcast %2 : vector<64x1xf32> to vector<64x16xf32>
    %53 = arith.addf %51, %52 : vector<64x16xf32>
    %54 = tpu.concatenate %53, %53, %53, %53, %53, %53, %53, %53 in 1 : vector<64x16xf32>, vector<64x16xf32>, vector<64x16xf32>, vector<64x16xf32>, vector<64x16xf32>, vector<64x16xf32>, vector<64x16xf32>, vector<64x16xf32> -> vector<64x128xf32>
    %55 = arith.addf %50, %54 : vector<64x128xf32>
    %cst_31 = arith.constant 0.000000e+00 : f32
    %56 = vector.broadcast %cst_31 : f32 to vector<64x128xf32>
    %57 = arith.cmpf ogt, %55, %56 : vector<64x128xf32>
    %cst_32 = arith.constant 2.000000e-01 : f32
    %58 = vector.broadcast %cst_32 : f32 to vector<64x128xf32>
    %59 = arith.mulf %58, %55 : vector<64x128xf32>
    %60 = arith.select %57, %55, %59 : vector<64x128xi1>, vector<64x128xf32>
    %cst_33 = arith.constant dense<0.000000e+00> : vector<64x128xf32>
    %61 = tpu.matmul %3, %60, %cst_33 {dimension_numbers = #tpu.dot_dimension_numbers<[1], [0], [0], [1], [0, 0, 1, 1], [], []>} : vector<64x64xf32>, vector<64x128xf32>, vector<64x128xf32> -> vector<64x128xf32>
    %62 = vector.extract_strided_slice %61 {offsets = [0, 0], sizes = [64, 16], strides = [1, 1]} : vector<64x128xf32> to vector<64x16xf32>
    %63 = vector.extract_strided_slice %61 {offsets = [0, 16], sizes = [64, 16], strides = [1, 1]} : vector<64x128xf32> to vector<64x16xf32>
    %64 = arith.maximumf %62, %63 : vector<64x16xf32>
    %65 = vector.extract_strided_slice %61 {offsets = [0, 32], sizes = [64, 16], strides = [1, 1]} : vector<64x128xf32> to vector<64x16xf32>
    %66 = arith.maximumf %64, %65 : vector<64x16xf32>
    %67 = vector.extract_strided_slice %61 {offsets = [0, 48], sizes = [64, 16], strides = [1, 1]} : vector<64x128xf32> to vector<64x16xf32>
    %68 = arith.maximumf %66, %67 : vector<64x16xf32>
    %69 = vector.extract_strided_slice %61 {offsets = [0, 64], sizes = [64, 16], strides = [1, 1]} : vector<64x128xf32> to vector<64x16xf32>
    %70 = arith.maximumf %68, %69 : vector<64x16xf32>
    %71 = vector.extract_strided_slice %61 {offsets = [0, 80], sizes = [64, 16], strides = [1, 1]} : vector<64x128xf32> to vector<64x16xf32>
    %72 = arith.maximumf %70, %71 : vector<64x16xf32>
    %73 = vector.extract_strided_slice %61 {offsets = [0, 96], sizes = [64, 16], strides = [1, 1]} : vector<64x128xf32> to vector<64x16xf32>
    %74 = arith.maximumf %72, %73 : vector<64x16xf32>
    %75 = vector.extract_strided_slice %61 {offsets = [0, 112], sizes = [64, 16], strides = [1, 1]} : vector<64x128xf32> to vector<64x16xf32>
    %76 = arith.maximumf %74, %75 : vector<64x16xf32>
    %77 = vector.broadcast %4 : vector<64x1xf32> to vector<64x16xf32>
    %78 = arith.addf %76, %77 : vector<64x16xf32>
    %cst_34 = arith.constant 0.000000e+00 : f32
    %79 = vector.broadcast %cst_34 : f32 to vector<64x16xf32>
    %80 = arith.cmpf ogt, %78, %79 : vector<64x16xf32>
    %cst_35 = arith.constant 2.000000e-01 : f32
    %81 = vector.broadcast %cst_35 : f32 to vector<64x16xf32>
    %82 = arith.mulf %81, %78 : vector<64x16xf32>
    %83 = arith.select %80, %78, %82 : vector<64x16xi1>, vector<64x16xf32>
    %c1_36 = arith.constant 1 : index
    %c0_37 = arith.constant 0 : index
    %c0_38 = arith.constant 0 : index
    %84 = vector.load %arg8[%c1_36, %c0_37, %c0_38] : memref<2x64x16xf32, #tpu.memory_space<vmem>>, vector<1x64x16xf32>
    %85 = vector.shape_cast %84 : vector<1x64x16xf32> to vector<64x16xf32>
    %86 = vector.shape_cast %83 : vector<64x16xf32> to vector<1x64x16xf32>
    tpu.vector_store %arg8[%c1_36, %c0_37, %c0_38], %86 {strides = array<i32>} : memref<2x64x16xf32, #tpu.memory_space<vmem>>, vector<1x64x16xf32>,
    return
  }
  func.func @transform_0(%arg0: i32) -> (i32, i32, i32) {
    %c0_i32 = arith.constant 0 : i32
    %c0_i32_0 = arith.constant 0 : i32
    %c0_i32_1 = arith.constant 0 : i32
    return %arg0, %c0_i32, %c0_i32_0 : i32, i32, i32
  }
  func.func @transform_1(%arg0: i32) -> (i32, i32, i32) {
    %c0_i32 = arith.constant 0 : i32
    %c0_i32_0 = arith.constant 0 : i32
    %c0_i32_1 = arith.constant 0 : i32
    return %arg0, %c0_i32, %c0_i32_0 : i32, i32, i32
  }
  func.func @transform_2(%arg0: i32) -> (i32, i32) {
    %c0_i32 = arith.constant 0 : i32
    %c0_i32_0 = arith.constant 0 : i32
    %c0_i32_1 = arith.constant 0 : i32
    return %c0_i32, %c0_i32_0 : i32, i32
  }
  func.func @transform_3(%arg0: i32) -> (i32, i32) {
    %c0_i32 = arith.constant 0 : i32
    %c0_i32_0 = arith.constant 0 : i32
    %c0_i32_1 = arith.constant 0 : i32
    return %c0_i32, %c0_i32_0 : i32, i32
  }
  func.func @transform_4(%arg0: i32) -> (i32, i32) {
    %c0_i32 = arith.constant 0 : i32
    %c0_i32_0 = arith.constant 0 : i32
    %c0_i32_1 = arith.constant 0 : i32
    return %c0_i32, %c0_i32_0 : i32, i32
  }
  func.func @transform_5(%arg0: i32) -> (i32, i32) {
    %c0_i32 = arith.constant 0 : i32
    %c0_i32_0 = arith.constant 0 : i32
    %c0_i32_1 = arith.constant 0 : i32
    return %c0_i32, %c0_i32_0 : i32, i32
  }
  func.func @transform_6(%arg0: i32) -> (i32, i32) {
    %c0_i32 = arith.constant 0 : i32
    %c0_i32_0 = arith.constant 0 : i32
    %c0_i32_1 = arith.constant 0 : i32
    return %c0_i32, %c0_i32_0 : i32, i32
  }
  func.func @transform_7(%arg0: i32) -> (i32, i32, i32) {
    %c0_i32 = arith.constant 0 : i32
    %c0_i32_0 = arith.constant 0 : i32
    %c0_i32_1 = arith.constant 0 : i32
    return %arg0, %c0_i32, %c0_i32_0 : i32, i32, i32
  }
}

</mosaic_0001>

<bundles_post_ra>
// kernel: mlp3_forward.1
= control target key start
LH: loop header
LB: loop body
LE: loop exit
PB: predicated region body
PF: predicated region fallthrough
CT: control target
= control target key end

     0   :  { %vm135_vm0 = vcmask 1040384   ;;  %vm110_vm1 = vcmask 72704   ;;  %vm2263_vm2 = vmmov 1   ;;  %v2264_v3 = vmov 0   ;;  %s2268_s13 = smov 64   ;;  %s2269_s14 = smov 80   ;;  %s3521_s1 = inlined_call_operand.vmem [shape: f32[2,9,16], index: 1, kind: input, shape index: {}]   ;;  %s3522_s0 = inlined_call_operand.vmem [shape: f32[2,9,128], index: 0, kind: input, shape index: {}]   ;;  %s3523_s3 = inlined_call_operand.vmem [shape: f32[64,9], index: 3, kind: input, shape index: {}]   ;;  %s3524_s2 = inlined_call_operand.vmem [shape: f32[64,9], index: 2, kind: input, shape index: {}]   ;;  %s3525_s4 = inlined_call_operand.vmem [shape: f32[64,1], index: 4, kind: input, shape index: {}]   ;;  %s3526_s5 = inlined_call_operand.vmem [shape: f32[64,64], index: 5, kind: input, shape index: {}]   ;;  %s3527_s6 = inlined_call_operand.vmem [shape: f32[64,1], index: 6, kind: input, shape index: {}]   ;;  %s3528_s7 = inlined_call_operand.vmem [shape: f32[2,64,16], index: 7, kind: output, shape index: {}]  }
   0x1   :  { %v68_v0 = vld [vmem:[%s3521_s1] sm:$0xff]  ;;  %v69_v1 = vld [vmem:[%s3521_s1 + $0x8] sm:$0x1]  ;;  %vm2318_vm3 = vmpackc.low %vm135_vm0, %vm2263_vm2  ;;  %2261 = vset.pattern.permute.xlu0 %v2264_v3  ;;  %2262 = vset.pattern.permute.xlu1 %v2264_v3  ;;  %s2270_s15 = smov 96   ;;  %s2271_s16 = smov 112   ;;  %vm447_vm4 = vcmask 523264  }
   0x2   :  { %v2196_v4 = vpack.c.bf16 %v69_v1, %v68_v0  ;;  %v66_v5 = vld [vmem:[%s3522_s0] sm:$0xff]  ;;  %v67_v6 = vld [vmem:[%s3522_s0 + $0x8] sm:$0x1]  ;;  %v36_v12 = vld [vmem:[%s3523_s3 + $0x10] sm:$0xff]  ;;  %vm420_vm5 = vcmask 130048   ;;  %vm429_vm6 = vcmask 261120  }
   0x3   :  { %v34_v7 = vld [vmem:[%s3523_s3] sm:$0xff]  ;;  %v2202_v8 = vpack.c.bf16 %v67_v6, %v66_v5  ;;  %v35_v10 = vld [vmem:[%s3523_s3 + $0x8] sm:$0xff]  ;;  %v2361_v13 = vld [vmem:[%s3524_s2 + $0x10] sm:$0xff]  ;;  %vm438_vm7 = vcmask 392192   ;;  %vm456_vm8 = vcmask 654336   ;;  %vm465_vm9 = vcmask 785408  }
   0x4   :  { %2080 = vmatprep.mubr.msk.f32.mxu0 %vm110_vm1, %v34_v7  ;;  %v2335_v9 = vld [vmem:[%s3524_s2] sm:$0xff]  ;;  %2198 = vmatprep.subr.msk.bf16.mxu0 %vm2318_vm3, %v2196_v4  ;;  %v2353_v11 = vld [vmem:[%s3524_s2 + $0x8] sm:$0xff]  ;;  %v1968_v14 = vld [vmem:[%s3521_s1 + $0x10] sm:$0xff]  ;;  %vm474_vm10 = vcmask 916480  }
   0x5   :  { %2096 = vmatprep.mubr.msk.f32.mxu1 %vm110_vm1, %v2335_v9  ;;  %2204 = vmatprep.subr.msk.bf16.mxu1 %vm2318_vm3, %v2202_v8  ;;  %v1969_v15 = vld [vmem:[%s3521_s1 + $0x18] sm:$0x1]  ;;  %v42_v16 = vld [vmem:[%s3525_s4] sm:$0xff]  ;;  %v44_v21 = vld [vmem:[%s3525_s4 + $0x10] sm:$0xff] }
   0x6   :  { %2201 = vmatpush3.bf16.msk.msra.mxu0 %vm2318_vm3, %v2196_v4  ;;  %2207 = vmatpush3.bf16.msk.msra.mxu1 %vm2318_vm3, %v2202_v8  ;;  %v37_v17 = vld [vmem:[%s3523_s3 + $0x18] sm:$0xff]  ;;  %v2224_v18 = vpack.c.bf16 %v1969_v15, %v1968_v14  ;;  %v38_v20 = vld [vmem:[%s3523_s3 + $0x20] sm:$0xff]  ;;  %v43_v23 = vld [vmem:[%s3525_s4 + $0x8] sm:$0xff] }
   0x7   :  { %v2384_v19 = vld [vmem:[%s3524_s2 + $0x18] sm:$0xff]  ;;  %72 = vperm.xlu0 %2261, %v42_v16   ;;  %v2395_v22 = vld [vmem:[%s3524_s2 + $0x20] sm:$0xff]  ;;  %82 = vperm.xlu1 %2262, %v44_v21   ;;  %v39_v25 = vld [vmem:[%s3523_s3 + $0x28] sm:$0xff] }
   0x8   :  { %2226 = vmatprep.subr.msk.bf16.mxu1 %vm2318_vm3, %v2224_v18  ;;  %v45_v24 = vld [vmem:[%s3525_s4 + $0x18] sm:$0xff]  ;;  %v2419_v26 = vld [vmem:[%s3524_s2 + $0x28] sm:$0xff]  ;;  %v40_v27 = vld [vmem:[%s3523_s3 + $0x30] sm:$0xff] }
   0x9   :  { %2081 = vmatmul.mubr.msk.f32.vlgmr.msra.gmra.mrb[0].mxu0 %vm110_vm1, %v35_v10  ;;  %2097 = vmatmul.mubr.msk.f32.vlgmr.msra.gmra.mrb[0].mxu1 %vm110_vm1, %v2353_v11  ;;  %v2427_v28 = vld [vmem:[%s3524_s2 + $0x30] sm:$0xff]  ;;  %v46_v29 = vld [vmem:[%s3525_s4 + $0x20] sm:$0xff]  ;;  %v47_v30 = vld [vmem:[%s3525_s4 + $0x28] sm:$0xff] }
   0xa   :  { %2083 = vmatprep.mubr.msk.f32.mxu0 %vm110_vm1, %v36_v12  ;;  %2099 = vmatprep.mubr.msk.f32.mxu1 %vm110_vm1, %v2361_v13  ;;  %v41_v31 = vld [vmem:[%s3523_s3 + $0x38] sm:$0xff]  ;;  %v48_v33 = vld [vmem:[%s3525_s4 + $0x30] sm:$0xff]  ;;  %s2266_s3 = smov 32   ;;  %v50_v15 = vld [vmem:[%s3526_s5] sm:$0xff] }
   0xb   :  { %2229 = vmatpush3.bf16.msk.msra.mxu1 %vm2318_vm3, %v2224_v18  ;;  %77 = vperm.xlu0 %2261, %v43_v23   ;;  %v2447_v32 = vld [vmem:[%s3524_s2 + $0x38] sm:$0xff]  ;;  %s2265_s2 = smov 16   ;;  %v2939_v2 = vld [vmem:[%s3526_s5 + $0x28] sm:$0xff] }
   0xc   :  { %87 = vperm.xlu1 %2262, %v45_v24   ;;  %v49_v34 = vld [vmem:[%s3525_s4 + $0x38] sm:$0xff]  ;;  %s2267_s4 = smov 48   ;;  %3544 = vst [vmem:[#allocation6_spill] sm:$0xff] %v2939_v2 }
   0xd   :  { %2084 = vmatmul.mubr.msk.f32.gmra.mrb[2].mxu0 %vm110_vm1, %v37_v17  ;;  %2100 = vmatmul.mubr.msk.f32.gmra.mrb[2].mxu1 %vm110_vm1, %v2384_v19 }
   0xe   :  { %2086 = vmatprep.mubr.msk.f32.mxu0 %vm110_vm1, %v38_v20  ;;  %2102 = vmatprep.mubr.msk.f32.mxu1 %vm110_vm1, %v2395_v22 }
   0xf   :  { %92 = vperm.xlu0 %2261, %v46_v29  }
  0x10   :  { %97 = vperm.xlu1 %2262, %v47_v30  }
  0x11   :  { %2087 = vmatmul.mubr.msk.f32.gmra.mrb[4].mxu0 %vm110_vm1, %v39_v25  ;;  %2103 = vmatmul.mubr.msk.f32.gmra.mrb[4].mxu1 %vm110_vm1, %v2419_v26 }
  0x12   :  { %2089 = vmatprep.mubr.msk.f32.mxu0 %vm110_vm1, %v40_v27  ;;  %2105 = vmatprep.mubr.msk.f32.mxu1 %vm110_vm1, %v2427_v28 }
  0x13   :  { %102 = vperm.xlu0 %2261, %v48_v33  }
  0x14   :  { %107 = vperm.xlu1 %2262, %v49_v34  }
  0x15   :  { %2090 = vmatmul.mubr.msk.f32.gmra.mrb[6].mxu0 %vm110_vm1, %v41_v31  ;;  %2106 = vmatmul.mubr.msk.f32.gmra.mrb[6].mxu1 %vm110_vm1, %v2447_v32 }
  0x16   :  { %2140 = vmatprep.mubr.msk.f32.mxu1 %vm110_vm1, %v34_v7  ;;  %2124 = vmatprep.mubr.msk.f32.mxu0 %vm447_vm4, %v50_v15 }
  0x19   :  { %2141 = vmatmul.mubr.msk.f32.vlgmr.msra.gmra.mrb[8].mxu1 %vm110_vm1, %v35_v10 }
  0x1a   :  { %2143 = vmatprep.mubr.msk.f32.mxu1 %vm110_vm1, %v36_v12 }
  0x1d   :  { %2144 = vmatmul.mubr.msk.f32.gmra.mrb[10].mxu1 %vm110_vm1, %v37_v17 }
  0x1e   :  { %2146 = vmatprep.mubr.msk.f32.mxu1 %vm110_vm1, %v38_v20 }
  0x21   :  { %2147 = vmatmul.mubr.msk.f32.gmra.mrb[12].mxu1 %vm110_vm1, %v39_v25 }
  0x22   :  { %2149 = vmatprep.mubr.msk.f32.mxu1 %vm110_vm1, %v40_v27 }
  0x25   :  { %2150 = vmatmul.mubr.msk.f32.gmra.mrb[14].mxu1 %vm110_vm1, %v41_v31 }
  0x26   :  { %2184 = vmatprep.mubr.msk.f32.mxu1 %vm447_vm4, %v50_v15 }
  0x86   :  { %v2466_v35 = vpop.permute.xlu0 %72  ;;  %v2520_v58 = vpop.permute.xlu1 %82 }
  0x8a   :  { %v2468_v36 = vpop.permute.xlu0 %77 }
  0x8b   :  { %v2534_v62 = vpop.permute.xlu1 %87 }
  0x8e   :  { %v2578_v5 = vpop.permute.xlu0 %92 }
  0x8f   :  { %v2574_v4 = vpop.permute.xlu1 %97 }
  0x92   :  { %v2616_v10 = vpop.permute.xlu0 %102 }
  0x93   :  { %v2610_v8 = vpop.permute.xlu1 %107 }
  0xdc   :  { %v2082_v37 = vpop.f32.mrb[0].mxu0  ;;  %v2473_v40 = vpop.f32.mrb[0].mxu1 }
  0xdd   :  { %v2471_v38 = vadd.f32 %v2082_v37, %v2468_v36  ;;  %v205_v39 = vpop.f32.mrb[1].mxu0  ;;  %v2478_v42 = vpop.f32.mrb[1].mxu1 }
  0xde   :  { %v2476_v41 = vadd.f32 %v205_v39, %v2466_v35 }
  0xdf   :  { %254 = vrot.lane.b32.xlu1 %v2471_v38, %s2265_s2 }
  0xe0   :  { %252 = vrot.lane.b32.xlu0 %v2476_v41, %s2265_s2  ;;  %v2085_v43 = vpop.f32.mrb[2].mxu0  ;;  %v2484_v45 = vpop.f32.mrb[2].mxu1 }
  0xe1   :  { %v215_v44 = vpop.f32.mrb[3].mxu0  ;;  %v2486_v46 = vpop.f32.mrb[3].mxu1  ;;  %v2539_v63 = vadd.f32 %v2085_v43, %v2534_v62 }
  0xe2   :  { %v2544_v1 = vadd.f32 %v215_v44, %v2520_v58 }
  0xe3   :  { %278 = vrot.lane.b32.xlu1 %v2471_v38, %s2266_s3 }
  0xe4   :  { %v2088_v47 = vpop.f32.mrb[4].mxu0  ;;  %276 = vrot.lane.b32.xlu0 %v2476_v41, %s2266_s3  ;;  %v2492_v49 = vpop.f32.mrb[4].mxu1 }
  0xe5   :  { %v225_v48 = vpop.f32.mrb[5].mxu0  ;;  %v2494_v50 = vpop.f32.mrb[5].mxu1  ;;  %v2581_v6 = vadd.f32 %v2088_v47, %v2574_v4 }
  0xe6   :  { %v2584_v7 = vadd.f32 %v225_v48, %v2578_v5 }
  0xe7   :  { %302 = vrot.lane.b32.xlu1 %v2471_v38, %s2267_s4 }
  0xe8   :  { %v2498_v51 = vpop.f32.mrb[6].mxu0  ;;  %300 = vrot.lane.b32.xlu0 %v2476_v41, %s2267_s4  ;;  %v2502_v53 = vpop.f32.mrb[6].mxu1 }
  0xe9   :  { %v235_v52 = vpop.f32.mrb[7].mxu0  ;;  %v2504_v54 = vpop.f32.mrb[7].mxu1  ;;  %v2620_v12 = vadd.f32 %v2498_v51, %v2610_v8 }
  0xea   :  { %v2623_v14 = vadd.f32 %v235_v52, %v2616_v10 }
  0xeb   :  { %326 = vrot.lane.b32.xlu1 %v2471_v38, %s2268_s13 }
  0xec   :  { %324 = vrot.lane.b32.xlu0 %v2476_v41, %s2268_s13  ;;  %v2510_v55 = vpop.f32.mrb[8].mxu1 }
  0xed   :  { %v2512_v56 = vpop.f32.mrb[9].mxu1  ;;  %v2660_v16 = vadd.f32 %v2510_v55, %v2468_v36 }
  0xee   :  { %v2664_v17 = vadd.f32 %v2512_v56, %v2466_v35 }
  0xef   :  { %350 = vrot.lane.b32.xlu1 %v2471_v38, %s2269_s14 }
  0xf0   :  { %348 = vrot.lane.b32.xlu0 %v2476_v41, %s2269_s14  ;;  %v2518_v57 = vpop.f32.mrb[10].mxu1 }
  0xf1   :  { %v2522_v59 = vpop.f32.mrb[11].mxu1  ;;  %v2707_v48 = vadd.f32 %v2518_v57, %v2534_v62 }
  0xf2   :  { %v2713_v56 = vadd.f32 %v2522_v59, %v2520_v58 }
  0xf3   :  { %374 = vrot.lane.b32.xlu1 %v2471_v38, %s2270_s15 }
  0xf4   :  { %372 = vrot.lane.b32.xlu0 %v2476_v41, %s2270_s15  ;;  %v2528_v60 = vpop.f32.mrb[12].mxu1 }
  0xf5   :  { %v2530_v61 = vpop.f32.mrb[13].mxu1 }
  0xf7   :  { %398 = vrot.lane.b32.xlu1 %v2471_v38, %s2271_s16 }
  0xf8   :  { %396 = vrot.lane.b32.xlu0 %v2476_v41, %s2271_s16  ;;  %v2541_v0 = vpop.f32.mrb[14].mxu1 }
  0xf9   :  { %v2546_v3 = vpop.f32.mrb[15].mxu1 }
  0xfb   :  { %258 = vrot.lane.b32.xlu1 %v2539_v63, %s2265_s2 }
  0xfc   :  { %256 = vrot.lane.b32.xlu0 %v2544_v1, %s2265_s2 }
  0xff   :  { %282 = vrot.lane.b32.xlu1 %v2539_v63, %s2266_s3 }
 0x100   :  { %280 = vrot.lane.b32.xlu0 %v2544_v1, %s2266_s3 }
 0x103   :  { %306 = vrot.lane.b32.xlu1 %v2539_v63, %s2267_s4 }
 0x104   :  { %304 = vrot.lane.b32.xlu0 %v2544_v1, %s2267_s4 }
 0x107   :  { %330 = vrot.lane.b32.xlu1 %v2539_v63, %s2268_s13 }
 0x108   :  { %328 = vrot.lane.b32.xlu0 %v2544_v1, %s2268_s13 }
 0x10b   :  { %354 = vrot.lane.b32.xlu1 %v2539_v63, %s2269_s14 }
 0x10c   :  { %352 = vrot.lane.b32.xlu0 %v2544_v1, %s2269_s14 }
 0x10f   :  { %378 = vrot.lane.b32.xlu1 %v2539_v63, %s2270_s15 }
 0x110   :  { %376 = vrot.lane.b32.xlu0 %v2544_v1, %s2270_s15 }
 0x113   :  { %402 = vrot.lane.b32.xlu1 %v2539_v63, %s2271_s16 }
 0x114   :  { %400 = vrot.lane.b32.xlu0 %v2544_v1, %s2271_s16 }
 0x117   :  { %262 = vrot.lane.b32.xlu1 %v2581_v6, %s2265_s2 }
 0x118   :  { %260 = vrot.lane.b32.xlu0 %v2584_v7, %s2265_s2 }
 0x11b   :  { %286 = vrot.lane.b32.xlu1 %v2581_v6, %s2266_s3 }
 0x11c   :  { %284 = vrot.lane.b32.xlu0 %v2584_v7, %s2266_s3 }
 0x11f   :  { %310 = vrot.lane.b32.xlu1 %v2581_v6, %s2267_s4 }
 0x120   :  { %308 = vrot.lane.b32.xlu0 %v2584_v7, %s2267_s4 }
 0x123   :  { %334 = vrot.lane.b32.xlu1 %v2581_v6, %s2268_s13 }
 0x124   :  { %332 = vrot.lane.b32.xlu0 %v2584_v7, %s2268_s13 }
 0x127   :  { %358 = vrot.lane.b32.xlu1 %v2581_v6, %s2269_s14 }
 0x128   :  { %356 = vrot.lane.b32.xlu0 %v2584_v7, %s2269_s14 }
 0x12b   :  { %382 = vrot.lane.b32.xlu1 %v2581_v6, %s2270_s15 }
 0x12c   :  { %380 = vrot.lane.b32.xlu0 %v2584_v7, %s2270_s15 }
 0x12f   :  { %406 = vrot.lane.b32.xlu1 %v2581_v6, %s2271_s16 }
 0x130   :  { %404 = vrot.lane.b32.xlu0 %v2584_v7, %s2271_s16 }
 0x133   :  { %266 = vrot.lane.b32.xlu1 %v2620_v12, %s2265_s2 }
 0x134   :  { %264 = vrot.lane.b32.xlu0 %v2623_v14, %s2265_s2 }
 0x137   :  { %290 = vrot.lane.b32.xlu1 %v2620_v12, %s2266_s3 }
 0x138   :  { %288 = vrot.lane.b32.xlu0 %v2623_v14, %s2266_s3 }
 0x13b   :  { %314 = vrot.lane.b32.xlu1 %v2620_v12, %s2267_s4 }
 0x13c   :  { %312 = vrot.lane.b32.xlu0 %v2623_v14, %s2267_s4 }
 0x13f   :  { %338 = vrot.lane.b32.xlu1 %v2620_v12, %s2268_s13 }
 0x140   :  { %336 = vrot.lane.b32.xlu0 %v2623_v14, %s2268_s13 }
 0x143   :  { %362 = vrot.lane.b32.xlu1 %v2620_v12, %s2269_s14 }
 0x144   :  { %360 = vrot.lane.b32.xlu0 %v2623_v14, %s2269_s14 }
 0x147   :  { %386 = vrot.lane.b32.xlu1 %v2620_v12, %s2270_s15 }
 0x148   :  { %384 = vrot.lane.b32.xlu0 %v2623_v14, %s2270_s15 }
 0x14b   :  { %410 = vrot.lane.b32.xlu1 %v2620_v12, %s2271_s16 }
 0x14c   :  { %408 = vrot.lane.b32.xlu0 %v2623_v14, %s2271_s16 }
 0x14f   :  { %1204 = vrot.lane.b32.xlu1 %v2660_v16, %s2265_s2 }
 0x150   :  { %1202 = vrot.lane.b32.xlu0 %v2664_v17, %s2265_s2 }
 0x151   :  { %v255_v18 = vpop.permute.xlu1 %254 }
 0x152   :  { %v253_v20 = vpop.permute.xlu0 %252  ;;  %v422_v33 = vsel %vm420_vm5, %v2471_v38, %v255_v18 }
 0x153   :  { %1228 = vrot.lane.b32.xlu1 %v2660_v16, %s2266_s3  ;;  %v421_v34 = vsel %vm420_vm5, %v2476_v41, %v253_v20 }
 0x154   :  { %1226 = vrot.lane.b32.xlu0 %v2664_v17, %s2266_s3 }
 0x155   :  { %v279_v21 = vpop.permute.xlu1 %278 }
 0x156   :  { %v277_v23 = vpop.permute.xlu0 %276  ;;  %v431_v35 = vsel %vm429_vm6, %v422_v33, %v279_v21 }
 0x157   :  { %1252 = vrot.lane.b32.xlu1 %v2660_v16, %s2267_s4  ;;  %v430_v37 = vsel %vm429_vm6, %v421_v34, %v277_v23 }
 0x158   :  { %1250 = vrot.lane.b32.xlu0 %v2664_v17, %s2267_s4 }
 0x159   :  { %v303_v24 = vpop.permute.xlu1 %302 }
 0x15a   :  { %v301_v25 = vpop.permute.xlu0 %300  ;;  %v440_v39 = vsel %vm438_vm7, %v431_v35, %v303_v24 }
 0x15b   :  { %1276 = vrot.lane.b32.xlu1 %v2660_v16, %s2268_s13  ;;  %v439_v44 = vsel %vm438_vm7, %v430_v37, %v301_v25 }
 0x15c   :  { %1274 = vrot.lane.b32.xlu0 %v2664_v17, %s2268_s13 }
 0x15d   :  { %v327_v27 = vpop.permute.xlu1 %326 }
 0x15e   :  { %v325_v29 = vpop.permute.xlu0 %324  ;;  %v449_v38 = vsel %vm447_vm4, %v440_v39, %v327_v27 }
 0x15f   :  { %1300 = vrot.lane.b32.xlu1 %v2660_v16, %s2269_s14  ;;  %v448_v41 = vsel %vm447_vm4, %v439_v44, %v325_v29 }
 0x160   :  { %1298 = vrot.lane.b32.xlu0 %v2664_v17, %s2269_s14 }
 0x161   :  { %v351_v30 = vpop.permute.xlu1 %350 }
 0x162   :  { %v349_v31 = vpop.permute.xlu0 %348  ;;  %v458_v47 = vsel %vm456_vm8, %v449_v38, %v351_v30 }
 0x163   :  { %1324 = vrot.lane.b32.xlu1 %v2660_v16, %s2270_s15  ;;  %v457_v51 = vsel %vm456_vm8, %v448_v41, %v349_v31 }
 0x164   :  { %1322 = vrot.lane.b32.xlu0 %v2664_v17, %s2270_s15 }
 0x165   :  { %v375_v36 = vpop.permute.xlu1 %374 }
 0x166   :  { %v373_v43 = vpop.permute.xlu0 %372  ;;  %v467_v52 = vsel %vm465_vm9, %v458_v47, %v375_v36 }
 0x167   :  { %1348 = vrot.lane.b32.xlu1 %v2660_v16, %s2271_s16  ;;  %v466_v15 = vsel %vm465_vm9, %v457_v51, %v373_v43 }
 0x168   :  { %1346 = vrot.lane.b32.xlu0 %v2664_v17, %s2271_s16 }
 0x169   :  { %v399_v55 = vpop.permute.xlu1 %398 }
 0x16a   :  { %v476_v18 = vsel %vm474_vm10, %v467_v52, %v399_v55  ;;  %v397_v20 = vpop.permute.xlu0 %396 }
 0x16b   :  { %v582_v21 = vadd.f32 %v2473_v40, %v476_v18  ;;  %v475_v23 = vsel %vm474_vm10, %v466_v15, %v397_v20  ;;  %1208 = vrot.lane.b32.xlu1 %v2707_v48, %s2265_s2 }
 0x16c   :  { %v577_v57 = vadd.f32 %v2478_v42, %v475_v23  ;;  %1206 = vrot.lane.b32.xlu0 %v2713_v56, %s2265_s2 }
 0x16d   :  { %v624_v62 = vmul.f32 0.2, %v582_v21  ;;  %v259_v58 = vpop.permute.xlu1 %258  ;;  %vm616_vm11 = vcmp.gt.f32.partialorder %v582_v21, 0.0 }
 0x16e   :  { %v623_v59 = vmul.f32 0.2, %v577_v57  ;;  %v257_v24 = vpop.permute.xlu0 %256  ;;  %vm615_vm12 = vcmp.gt.f32.partialorder %v577_v57, 0.0  ;;  %v424_v37 = vsel %vm420_vm5, %v2539_v63, %v259_v58 }
 0x16f   :  { %1232 = vrot.lane.b32.xlu1 %v2707_v48, %s2266_s3  ;;  %v632_v40 = vsel %vm616_vm11, %v582_v21, %v624_v62  ;;  %v423_v39 = vsel %vm420_vm5, %v2544_v1, %v257_v24  ;;  %v2761_v1 = vadd.f32 %v2528_v60, %v2574_v4  ;;  %v2767_v21 = vadd.f32 %v2530_v61, %v2578_v5 }
 0x170   :  { %1230 = vrot.lane.b32.xlu0 %v2713_v56, %s2266_s3  ;;  %v631_v25 = vsel %vm615_vm12, %v577_v57, %v623_v59 }
 0x171   :  { %v283_v27 = vpop.permute.xlu1 %282  ;;  %v2208_v29 = vpack.c.bf16 %v632_v40, %v631_v25 }
 0x172   :  { %v281_v42 = vpop.permute.xlu0 %280  ;;  %v433_v43 = vsel %vm429_vm6, %v424_v37, %v283_v27 }
 0x173   :  { %1256 = vrot.lane.b32.xlu1 %v2707_v48, %s2267_s4  ;;  %2209 = vmatprep.subr.bf16.mxu0 %v2208_v29  ;;  %v432_v38 = vsel %vm429_vm6, %v423_v39, %v281_v42 }
 0x174   :  { %1254 = vrot.lane.b32.xlu0 %v2713_v56, %s2267_s4  ;;  %2211 = vmatpush3.bf16.msra.mxu0 %v2208_v29 }
 0x175   :  { %v307_v30 = vpop.permute.xlu1 %306 }
 0x176   :  { %v305_v31 = vpop.permute.xlu0 %304  ;;  %v442_v41 = vsel %vm438_vm7, %v433_v43, %v307_v30 }
 0x177   :  { %1280 = vrot.lane.b32.xlu1 %v2707_v48, %s2268_s13  ;;  %v441_v51 = vsel %vm438_vm7, %v432_v38, %v305_v31 }
 0x178   :  { %1278 = vrot.lane.b32.xlu0 %v2713_v56, %s2268_s13 }
 0x179   :  { %v331_v33 = vpop.permute.xlu1 %330 }
 0x17a   :  { %v329_v34 = vpop.permute.xlu0 %328  ;;  %v451_v52 = vsel %vm447_vm4, %v442_v41, %v331_v33 }
 0x17b   :  { %1304 = vrot.lane.b32.xlu1 %v2707_v48, %s2269_s14  ;;  %v450_v63 = vsel %vm447_vm4, %v441_v51, %v329_v34 }
 0x17c   :  { %1302 = vrot.lane.b32.xlu0 %v2713_v56, %s2269_s14 }
 0x17d   :  { %v355_v35 = vpop.permute.xlu1 %354 }
 0x17e   :  { %v353_v36 = vpop.permute.xlu0 %352  ;;  %v460_v55 = vsel %vm456_vm8, %v451_v52, %v355_v35 }
 0x17f   :  { %1328 = vrot.lane.b32.xlu1 %v2707_v48, %s2270_s15  ;;  %v459_v15 = vsel %vm456_vm8, %v450_v63, %v353_v36 }
 0x180   :  { %1326 = vrot.lane.b32.xlu0 %v2713_v56, %s2270_s15 }
 0x181   :  { %v379_v44 = vpop.permute.xlu1 %378 }
 0x182   :  { %v377_v47 = vpop.permute.xlu0 %376  ;;  %v469_v18 = vsel %vm465_vm9, %v460_v55, %v379_v44 }
 0x183   :  { %1352 = vrot.lane.b32.xlu1 %v2707_v48, %s2271_s16  ;;  %v468_v23 = vsel %vm465_vm9, %v459_v15, %v377_v47  ;;  %v2821_v15 = vadd.f32 %v2546_v3, %v2616_v10 }
 0x184   :  { %1350 = vrot.lane.b32.xlu0 %v2713_v56, %s2271_s16 }
 0x185   :  { %v403_v20 = vpop.permute.xlu1 %402 }
 0x186   :  { %v478_v57 = vsel %vm474_vm10, %v469_v18, %v403_v20  ;;  %v401_v62 = vpop.permute.xlu0 %400 }
 0x187   :  { %v592_v58 = vadd.f32 %v2484_v45, %v478_v57  ;;  %v477_v59 = vsel %vm474_vm10, %v468_v23, %v401_v62  ;;  %1212 = vrot.lane.b32.xlu1 %v2761_v1, %s2265_s2 }
 0x188   :  { %v587_v60 = vadd.f32 %v2486_v46, %v477_v59  ;;  %1210 = vrot.lane.b32.xlu0 %v2767_v21, %s2265_s2 }
 0x189   :  { %v626_v4 = vmul.f32 0.2, %v592_v58  ;;  %v263_v61 = vpop.permute.xlu1 %262  ;;  %vm618_vm13 = vcmp.gt.f32.partialorder %v592_v58, 0.0 }
 0x18a   :  { %v625_v5 = vmul.f32 0.2, %v587_v60  ;;  %v261_v24 = vpop.permute.xlu0 %260  ;;  %vm617_vm14 = vcmp.gt.f32.partialorder %v587_v60, 0.0  ;;  %v426_v35 = vsel %vm420_vm5, %v2581_v6, %v263_v61 }
 0x18b   :  { %1236 = vrot.lane.b32.xlu1 %v2761_v1, %s2266_s3  ;;  %v634_v45 = vsel %vm618_vm13, %v592_v58, %v626_v4  ;;  %v425_v36 = vsel %vm420_vm5, %v2584_v7, %v261_v24  ;;  %v2815_v7 = vadd.f32 %v2541_v0, %v2610_v8 }
 0x18c   :  { %1234 = vrot.lane.b32.xlu0 %v2767_v21, %s2266_s3  ;;  %v633_v40 = vsel %vm617_vm14, %v587_v60, %v625_v5 }
 0x18d   :  { %v287_v25 = vpop.permute.xlu1 %286  ;;  %v2212_v27 = vpack.c.bf16 %v634_v45, %v633_v40 }
 0x18e   :  { %v285_v46 = vpop.permute.xlu0 %284  ;;  %v435_v37 = vsel %vm429_vm6, %v426_v35, %v287_v25 }
 0x18f   :  { %1260 = vrot.lane.b32.xlu1 %v2761_v1, %s2267_s4  ;;  %2213 = vmatprep.subr.bf16.mxu0 %v2212_v27  ;;  %v434_v43 = vsel %vm429_vm6, %v425_v36, %v285_v46 }
 0x190   :  { %1258 = vrot.lane.b32.xlu0 %v2767_v21, %s2267_s4  ;;  %2215 = vmatpush3.bf16.msra.mxu0 %v2212_v27 }
 0x191   :  { %v311_v29 = vpop.permute.xlu1 %310 }
 0x192   :  { %v309_v42 = vpop.permute.xlu0 %308  ;;  %v444_v44 = vsel %vm438_vm7, %v435_v37, %v311_v29 }
 0x193   :  { %1284 = vrot.lane.b32.xlu1 %v2761_v1, %s2268_s13  ;;  %v443_v41 = vsel %vm438_vm7, %v434_v43, %v309_v42 }
 0x194   :  { %1282 = vrot.lane.b32.xlu0 %v2767_v21, %s2268_s13 }
 0x195   :  { %v335_v30 = vpop.permute.xlu1 %334 }
 0x196   :  { %v333_v31 = vpop.permute.xlu0 %332  ;;  %v453_v47 = vsel %vm447_vm4, %v444_v44, %v335_v30  ;;  %v58_v44 = vld [vmem:[%s3527_s6] sm:$0xff] }
 0x197   :  { %1308 = vrot.lane.b32.xlu1 %v2761_v1, %s2269_s14  ;;  %v452_v6 = vsel %vm447_vm4, %v443_v41, %v333_v31 }
 0x198   :  { %1306 = vrot.lane.b32.xlu0 %v2767_v21, %s2269_s14 }
 0x199   :  { %v359_v33 = vpop.permute.xlu1 %358 }
 0x19a   :  { %v357_v34 = vpop.permute.xlu0 %356  ;;  %v462_v51 = vsel %vm456_vm8, %v453_v47, %v359_v33 }
 0x19b   :  { %1332 = vrot.lane.b32.xlu1 %v2761_v1, %s2270_s15  ;;  %v461_v52 = vsel %vm456_vm8, %v452_v6, %v357_v34 }
 0x19c   :  { %1330 = vrot.lane.b32.xlu0 %v2767_v21, %s2270_s15 }
 0x19d   :  { %v383_v39 = vpop.permute.xlu1 %382 }
 0x19e   :  { %v381_v38 = vpop.permute.xlu0 %380  ;;  %v471_v63 = vsel %vm465_vm9, %v462_v51, %v383_v39 }
 0x19f   :  { %1356 = vrot.lane.b32.xlu1 %v2761_v1, %s2271_s16  ;;  %v470_v18 = vsel %vm465_vm9, %v461_v52, %v381_v38 }
 0x1a0   :  { %1354 = vrot.lane.b32.xlu0 %v2767_v21, %s2271_s16 }
 0x1a1   :  { %v407_v55 = vpop.permute.xlu1 %406 }
 0x1a2   :  { %v480_v20 = vsel %vm474_vm10, %v471_v63, %v407_v55  ;;  %v405_v23 = vpop.permute.xlu0 %404  ;;  %v61_v63 = vld [vmem:[%s3527_s6 + $0x18] sm:$0xff] }
 0x1a3   :  { %v602_v57 = vadd.f32 %v2492_v49, %v480_v20  ;;  %v479_v62 = vsel %vm474_vm10, %v470_v18, %v405_v23  ;;  %1216 = vrot.lane.b32.xlu1 %v2815_v7, %s2265_s2  ;;  %v60_v18 = vld [vmem:[%s3527_s6 + $0x10] sm:$0xff] }
 0x1a4   :  { %v597_v0 = vadd.f32 %v2494_v50, %v479_v62  ;;  %1214 = vrot.lane.b32.xlu0 %v2821_v15, %s2265_s2 }
 0x1a5   :  { %v628_v8 = vmul.f32 0.2, %v602_v57  ;;  %v267_v3 = vpop.permute.xlu1 %266  ;;  %vm620_vm15 = vcmp.gt.f32.partialorder %v602_v57, 0.0 }
 0x1a6   :  { %v627_v10 = vmul.f32 0.2, %v597_v0  ;;  %v265_v58 = vpop.permute.xlu0 %264  ;;  %vm619_vm0 = vcmp.gt.f32.partialorder %v597_v0, 0.0  ;;  %v428_v27 = vsel %vm420_vm5, %v2620_v12, %v267_v3 }
 0x1a7   :  { %1240 = vrot.lane.b32.xlu1 %v2815_v7, %s2266_s3  ;;  %v636_v49 = vsel %vm620_vm15, %v602_v57, %v628_v8  ;;  %v427_v46 = vsel %vm420_vm5, %v2623_v14, %v265_v58  ;;  %v59_v14 = vld [vmem:[%s3527_s6 + $0x8] sm:$0xff]  ;;  %v62_v8 = vld [vmem:[%s3527_s6 + $0x20] sm:$0xff] }
 0x1a8   :  { %1238 = vrot.lane.b32.xlu0 %v2821_v15, %s2266_s3  ;;  %v635_v59 = vsel %vm619_vm0, %v597_v0, %v627_v10  ;;  %v63_v57 = vld [vmem:[%s3527_s6 + $0x28] sm:$0xff]  ;;  %v65_v10 = vld [vmem:[%s3527_s6 + $0x38] sm:$0xff] }
 0x1a9   :  { %v291_v60 = vpop.permute.xlu1 %290  ;;  %v2216_v4 = vpack.c.bf16 %v636_v49, %v635_v59  ;;  %v2904_v58 = vld [vmem:[%s3526_s5 + $0x8] sm:$0xff]  ;;  %v64_v49 = vld [vmem:[%s3527_s6 + $0x30] sm:$0xff] }
 0x1aa   :  { %v289_v50 = vpop.permute.xlu0 %288  ;;  %v437_v29 = vsel %vm429_vm6, %v428_v27, %v291_v60  ;;  %3540 = vst [vmem:[#allocation2_spill] sm:$0xff] %v2904_v58  ;;  %v2914_v59 = vld [vmem:[%s3526_s5 + $0x10] sm:$0xff]  ;;  %v2923_v60 = vld [vmem:[%s3526_s5 + $0x18] sm:$0xff] }
 0x1ab   :  { %1264 = vrot.lane.b32.xlu1 %v2815_v7, %s2267_s4  ;;  %2217 = vmatprep.subr.bf16.mxu0 %v2216_v4  ;;  %v436_v30 = vsel %vm429_vm6, %v427_v46, %v289_v50  ;;  %3541 = vst [vmem:[#allocation3_spill] sm:$0xff] %v2914_v59  ;;  %3542 = vst [vmem:[#allocation4_spill] sm:$0xff] %v2923_v60  ;;  %v2944_v50 = vld [vmem:[%s3526_s5 + $0x30] sm:$0xff] }
 0x1ac   :  { %1262 = vrot.lane.b32.xlu0 %v2821_v15, %s2267_s4  ;;  %2219 = vmatpush3.bf16.msra.mxu0 %v2216_v4  ;;  %v2930_v4 = vld [vmem:[%s3526_s5 + $0x20] sm:$0xff]  ;;  %3545 = vst [vmem:[#allocation7_spill] sm:$0xff] %v2944_v50 }
 0x1ad   :  { %v315_v61 = vpop.permute.xlu1 %314  ;;  %3543 = vst [vmem:[#allocation5_spill] sm:$0xff] %v2930_v4 }
 0x1ae   :  { %v313_v5 = vpop.permute.xlu0 %312  ;;  %v446_v31 = vsel %vm438_vm7, %v437_v29, %v315_v61  ;;  %v2953_v61 = vld [vmem:[%s3526_s5 + $0x38] sm:$0xff] }
 0x1af   :  { %1288 = vrot.lane.b32.xlu1 %v2815_v7, %s2268_s13  ;;  %v445_v34 = vsel %vm438_vm7, %v436_v30, %v313_v5  ;;  %3546 = vst [vmem:[#allocation8_spill] sm:$0xff] %v2953_v61 }
 0x1b0   :  { %1286 = vrot.lane.b32.xlu0 %v2821_v15, %s2268_s13 }
 0x1b1   :  { %v339_v24 = vpop.permute.xlu1 %338 }
 0x1b2   :  { %v337_v45 = vpop.permute.xlu0 %336  ;;  %v455_v35 = vsel %vm447_vm4, %v446_v31, %v339_v24 }
 0x1b3   :  { %1312 = vrot.lane.b32.xlu1 %v2815_v7, %s2269_s14  ;;  %v454_v12 = vsel %vm447_vm4, %v445_v34, %v337_v45 }
 0x1b4   :  { %1310 = vrot.lane.b32.xlu0 %v2821_v15, %s2269_s14 }
 0x1b5   :  { %v363_v40 = vpop.permute.xlu1 %362 }
 0x1b6   :  { %v361_v25 = vpop.permute.xlu0 %360  ;;  %v464_v36 = vsel %vm456_vm8, %v455_v35, %v363_v40 }
 0x1b7   :  { %1336 = vrot.lane.b32.xlu1 %v2815_v7, %s2270_s15  ;;  %v463_v37 = vsel %vm456_vm8, %v454_v12, %v361_v25 }
 0x1b8   :  { %1334 = vrot.lane.b32.xlu0 %v2821_v15, %s2270_s15 }
 0x1b9   :  { %v387_v42 = vpop.permute.xlu1 %386 }
 0x1ba   :  { %v385_v33 = vpop.permute.xlu0 %384  ;;  %v473_v39 = vsel %vm465_vm9, %v464_v36, %v387_v42 }
 0x1bb   :  { %1360 = vrot.lane.b32.xlu1 %v2815_v7, %s2271_s16  ;;  %v472_v38 = vsel %vm465_vm9, %v463_v37, %v385_v33 }
 0x1bc   :  { %1358 = vrot.lane.b32.xlu0 %v2821_v15, %s2271_s16 }
 0x1bd   :  { %v411_v43 = vpop.permute.xlu1 %410 }
 0x1be   :  { %v482_v41 = vsel %vm474_vm10, %v473_v39, %v411_v43  ;;  %v409_v47 = vpop.permute.xlu0 %408 }
 0x1bf   :  { %v612_v6 = vadd.f32 %v2502_v53, %v482_v41  ;;  %v481_v51 = vsel %vm474_vm10, %v472_v38, %v409_v47  ;;  %1007 = vperm.xlu1 %2262, %v59_v14   ;;  %v1966_v53 = vld [vmem:[%s3522_s0 + $0x10] sm:$0xff] }
 0x1c0   :  { %v607_v52 = vadd.f32 %v2504_v54, %v481_v51  ;;  %1002 = vperm.xlu0 %2261, %v58_v44   ;;  %v1967_v54 = vld [vmem:[%s3522_s0 + $0x18] sm:$0x1] }
 0x1c1   :  { %v630_v55 = vmul.f32 0.2, %v612_v6  ;;  %vm622_vm2 = vcmp.gt.f32.partialorder %v612_v6, 0.0  ;;  %v2230_v3 = vpack.c.bf16 %v1967_v54, %v1966_v53 }
 0x1c2   :  { %v629_v20 = vmul.f32 0.2, %v607_v52  ;;  %vm621_vm11 = vcmp.gt.f32.partialorder %v607_v52, 0.0 }
 0x1c3   :  { %1017 = vperm.xlu1 %2262, %v61_v63   ;;  %v638_v23 = vsel %vm622_vm2, %v612_v6, %v630_v55 }
 0x1c4   :  { %1012 = vperm.xlu0 %2261, %v60_v18   ;;  %v637_v62 = vsel %vm621_vm11, %v607_v52, %v629_v20 }
 0x1c5   :  { %v2220_v0 = vpack.c.bf16 %v638_v23, %v637_v62 }
 0x1c7   :  { %1027 = vperm.xlu1 %2262, %v63_v57   ;;  %2221 = vmatprep.subr.bf16.mxu0 %v2220_v0 }
 0x1c8   :  { %1022 = vperm.xlu0 %2261, %v62_v8   ;;  %2223 = vmatpush3.bf16.msra.mxu0 %v2220_v0 }
 0x1c9   :  { %2232 = vmatprep.subr.msk.bf16.mxu0 %vm2318_vm3, %v2230_v3 }
 0x1cb   :  { %1037 = vperm.xlu1 %2262, %v65_v10   ;;  %2125 = vmatmul.mubr.msk.f32.vlgmr.msra.gmra.mrb[8].mxu0 %vm447_vm4, %v2904_v58 }
 0x1cc   :  { %1032 = vperm.xlu0 %2261, %v64_v49   ;;  %2235 = vmatpush3.bf16.msk.msra.mxu0 %vm2318_vm3, %v2230_v3 }
 0x1cd   :  { %2127 = vmatprep.mubr.msk.f32.mxu0 %vm447_vm4, %v2914_v59 }
 0x1cf   :  { %2128 = vmatmul.mubr.msk.f32.gmra.mrb[10].mxu0 %vm447_vm4, %v2923_v60 }
 0x1d0   :  { %2130 = vmatprep.mubr.msk.f32.mxu0 %vm447_vm4, %v2930_v4 }
 0x1d3   :  { %2131 = vmatmul.mubr.msk.f32.gmra.mrb[12].mxu0 %vm447_vm4, %v2939_v2 }
 0x1d4   :  { %2133 = vmatprep.mubr.msk.f32.mxu0 %vm447_vm4, %v2944_v50 }
 0x1d7   :  { %2134 = vmatmul.mubr.msk.f32.gmra.mrb[14].mxu0 %vm447_vm4, %v2953_v61 }
 0x1d8   :  { %2156 = vmatprep.mubr.msk.f32.mxu0 %vm110_vm1, %v2335_v9  ;;  %v1205_v9 = vpop.permute.xlu1 %1204 }
 0x1d9   :  { %v1371_v4 = vsel %vm420_vm5, %v2660_v16, %v1205_v9 }
 0x1db   :  { %2157 = vmatmul.mubr.msk.f32.vlgmr.msra.gmra.mrb[16].mxu0 %vm110_vm1, %v2353_v11  ;;  %v1203_v11 = vpop.permute.xlu0 %1202 }
 0x1dc   :  { %2159 = vmatprep.mubr.msk.f32.mxu0 %vm110_vm1, %v2361_v13  ;;  %v1229_v5 = vpop.permute.xlu1 %1228  ;;  %v1370_v60 = vsel %vm420_vm5, %v2664_v17, %v1203_v11 }
 0x1dd   :  { %v1379_v59 = vsel %vm429_vm6, %v1371_v4, %v1229_v5 }
 0x1df   :  { %2160 = vmatmul.mubr.msk.f32.gmra.mrb[18].mxu0 %vm110_vm1, %v2384_v19  ;;  %v1227_v24 = vpop.permute.xlu0 %1226 }
 0x1e0   :  { %2162 = vmatprep.mubr.msk.f32.mxu0 %vm110_vm1, %v2395_v22  ;;  %v1253_v13 = vpop.permute.xlu1 %1252 }
 0x1e3   :  { %2163 = vmatmul.mubr.msk.f32.gmra.mrb[20].mxu0 %vm110_vm1, %v2419_v26  ;;  %v1251_v45 = vpop.permute.xlu0 %1250 }
 0x1e4   :  { %2165 = vmatprep.mubr.msk.f32.mxu0 %vm110_vm1, %v2427_v28  ;;  %v1277_v40 = vpop.permute.xlu1 %1276 }
 0x1e7   :  { %2166 = vmatmul.mubr.msk.f32.gmra.mrb[22].mxu0 %vm110_vm1, %v2447_v32  ;;  %v1275_v19 = vpop.permute.xlu0 %1274 }
 0x1e8   :  { %v1301_v25 = vpop.permute.xlu1 %1300 }
 0x1eb   :  { %v2973_v27 = vpop.permute.xlu0 %1298 }
 0x1ec   :  { %v2975_v22 = vpop.permute.xlu1 %1324 }
 0x1ef   :  { %v2977_v26 = vpop.permute.xlu0 %1322 }
 0x1f0   :  { %v2979_v46 = vpop.permute.xlu1 %1348 }
 0x1f3   :  { %v2981_v28 = vpop.permute.xlu0 %1346 }
 0x1f4   :  { %v1209_v32 = vpop.permute.xlu1 %1208 }
 0x1f7   :  { %v1207_v29 = vpop.permute.xlu0 %1206 }
 0x1f8   :  { %v1233_v42 = vpop.permute.xlu1 %1232 }
 0x1fb   :  { %v1231_v30 = vpop.permute.xlu0 %1230 }
 0x1fc   :  { %v2983_v31 = vpop.permute.xlu1 %1256 }
 0x1ff   :  { %v2985_v33 = vpop.permute.xlu0 %1254 }
 0x200   :  { %v2987_v34 = vpop.permute.xlu1 %1280 }
 0x203   :  { %v2989_v35 = vpop.permute.xlu0 %1278 }
 0x204   :  { %v2991_v12 = vpop.permute.xlu1 %1304 }
 0x207   :  { %v2993_v36 = vpop.permute.xlu0 %1302 }
 0x208   :  { %v2995_v14 = vpop.permute.xlu1 %1328 }
 0x20b   :  { %v2997_v37 = vpop.permute.xlu0 %1326 }
 0x20c   :  { %v2999_v39 = vpop.permute.xlu1 %1352 }
 0x20f   :  { %v3001_v43 = vpop.permute.xlu0 %1350 }
 0x210   :  { %v1213_v44 = vpop.permute.xlu1 %1212 }
 0x213   :  { %v1211_v38 = vpop.permute.xlu0 %1210 }
 0x214   :  { %v1237_v41 = vpop.permute.xlu1 %1236 }
 0x217   :  { %v3003_v47 = vpop.permute.xlu0 %1234 }
 0x218   :  { %v3005_v6 = vpop.permute.xlu1 %1260 }
 0x21b   :  { %v3007_v51 = vpop.permute.xlu0 %1258 }
 0x21c   :  { %v3009_v52 = vpop.permute.xlu1 %1284 }
 0x21f   :  { %v3011_v63 = vpop.permute.xlu0 %1282 }
 0x220   :  { %v3013_v55 = vpop.permute.xlu1 %1308 }
 0x223   :  { %v3015_v18 = vpop.permute.xlu0 %1306 }
 0x224   :  { %v3017_v20 = vpop.permute.xlu1 %1332 }
 0x227   :  { %v3019_v53 = vpop.permute.xlu0 %1330 }
 0x228   :  { %v3021_v54 = vpop.permute.xlu1 %1356 }
 0x22b   :  { %v3023_v23 = vpop.permute.xlu0 %1354 }
 0x22c   :  { %v3025_v57 = vpop.permute.xlu1 %1216 }
 0x22f   :  { %v3027_v62 = vpop.permute.xlu0 %1214 }
 0x230   :  { %v3029_v0 = vpop.permute.xlu1 %1240 }
 0x233   :  { %v3031_v8 = vpop.permute.xlu0 %1238 }
 0x234   :  { %v3035_v10 = vpop.permute.xlu1 %1264 }
 0x235   :  { %3547 = vst [vmem:[#allocation9_spill] sm:$0xff] %v3035_v10 }
 0x237   :  { %v3041_v61 = vpop.permute.xlu0 %1262 }
 0x238   :  { %3548 = vst [vmem:[#allocation10_spill] sm:$0xff] %v3041_v61  ;;  %v3058_v58 = vpop.permute.xlu1 %1288  ;;  %v1387_v61 = vsel %vm438_vm7, %v1379_v59, %v1253_v13 }
 0x239   :  { %v1395_v9 = vsel %vm447_vm4, %v1387_v61, %v1277_v40  ;;  %v1372_v61 = vsel %vm420_vm5, %v2713_v56, %v1207_v29  ;;  %v1375_v56 = vsel %vm420_vm5, %v2761_v1, %v1213_v44 }
 0x23a   :  { %v1403_v11 = vsel %vm456_vm8, %v1395_v9, %v1301_v25  ;;  %v1380_v13 = vsel %vm429_vm6, %v1372_v61, %v1231_v30  ;;  %v1383_v1 = vsel %vm429_vm6, %v1375_v56, %v1237_v41 }
 0x23b   :  { %v3062_v10 = vpop.permute.xlu0 %1286 }
 0x23c   :  { %v1313_v25 = vpop.permute.xlu1 %1312 }
 0x23f   :  { %v1311_v29 = vpop.permute.xlu0 %1310 }
 0x29e   :  { %v3033_v3 = vpop.f32.mrb[8].mxu0 }
 0x29f   :  { %778 = vrot.lane.b32.xlu1 %v3033_v3, %s2271_s16  ;;  %v3039_v49 = vpop.f32.mrb[9].mxu0 }
 0x2a0   :  { %776 = vrot.lane.b32.xlu0 %v3039_v49, %s2271_s16 }
 0x2a2   :  { %v3045_v50 = vpop.f32.mrb[10].mxu0 }
 0x2a3   :  { %3549 = vst [vmem:[#allocation11_spill] sm:$0xff] %v3045_v50  ;;  %810 = vrot.lane.b32.xlu1 %v3033_v3, %s2270_s15  ;;  %v3049_v2 = vpop.f32.mrb[11].mxu0  ;;  %v1378_v50 = vsel %vm429_vm6, %v1370_v60, %v1227_v24  ;;  %v1411_v60 = vsel %vm465_vm9, %v1403_v11, %v2975_v22 }
 0x2a4   :  { %3550 = vst [vmem:[#allocation12_spill] sm:$0xff] %v3049_v2  ;;  %808 = vrot.lane.b32.xlu0 %v3039_v49, %s2270_s15  ;;  %v1386_v16 = vsel %vm438_vm7, %v1378_v50, %v1251_v45  ;;  %v1373_v50 = vsel %vm420_vm5, %v2707_v48, %v1209_v32  ;;  %v1419_v40 = vsel %vm474_vm10, %v1411_v60, %v2979_v46 }
 0x2a5   :  { %v1394_v4 = vsel %vm447_vm4, %v1386_v16, %v1275_v19  ;;  %v1381_v24 = vsel %vm429_vm6, %v1373_v50, %v1233_v42  ;;  %v1388_v48 = vsel %vm438_vm7, %v1380_v13, %v2985_v33  ;;  %v1374_v32 = vsel %vm420_vm5, %v2767_v21, %v1211_v38 }
 0x2a6   :  { %v3064_v2 = vpop.f32.mrb[12].mxu0  ;;  %v1402_v59 = vsel %vm456_vm8, %v1394_v4, %v2973_v27  ;;  %v1389_v19 = vsel %vm438_vm7, %v1381_v24, %v2983_v31  ;;  %v1396_v46 = vsel %vm447_vm4, %v1388_v48, %v2989_v35  ;;  %v1382_v30 = vsel %vm429_vm6, %v1374_v32, %v3003_v47 }
 0x2a7   :  { %842 = vrot.lane.b32.xlu1 %v3033_v3, %s2269_s14  ;;  %v3070_v17 = vpop.f32.mrb[13].mxu0  ;;  %v1410_v5 = vsel %vm465_vm9, %v1402_v59, %v2977_v26  ;;  %v1397_v26 = vsel %vm447_vm4, %v1389_v19, %v2987_v34  ;;  %v1391_v31 = vsel %vm438_vm7, %v1383_v1, %v3005_v6  ;;  %v1390_v34 = vsel %vm438_vm7, %v1382_v30, %v3007_v51  ;;  %v3551_v59 = vld [vmem:[#allocation9_spill] sm:$0xff] }
 0x2a8   :  { %840 = vrot.lane.b32.xlu0 %v3039_v49, %s2269_s14  ;;  %v1418_v22 = vsel %vm474_vm10, %v1410_v5, %v2981_v28  ;;  %v1405_v42 = vsel %vm456_vm8, %v1397_v26, %v2991_v12  ;;  %v1404_v28 = vsel %vm456_vm8, %v1396_v46, %v2993_v36  ;;  %v1399_v35 = vsel %vm447_vm4, %v1391_v31, %v3009_v52 }
 0x2a9   :  { %v1413_v21 = vsel %vm465_vm9, %v1405_v42, %v2995_v14  ;;  %v1412_v33 = vsel %vm465_vm9, %v1404_v28, %v2997_v37  ;;  %v1398_v36 = vsel %vm447_vm4, %v1390_v34, %v3011_v63  ;;  %v1407_v44 = vsel %vm456_vm8, %v1399_v35, %v3013_v55  ;;  %v1337_v63 = vpop.permute.xlu1 %1336 }
 0x2aa   :  { %v3088_v45 = vpop.f32.mrb[14].mxu0  ;;  %v1421_v37 = vsel %vm474_vm10, %v1413_v21, %v2999_v39  ;;  %v1406_v41 = vsel %vm456_vm8, %v1398_v36, %v3015_v18  ;;  %v1415_v47 = vsel %vm465_vm9, %v1407_v44, %v3017_v20  ;;  %v1420_v51 = vsel %vm474_vm10, %v1412_v33, %v3001_v43  ;;  %v1335_v20 = vpop.permute.xlu0 %1334  ;;  %v3553_v21 = vld [vmem:[#allocation11_spill] sm:$0xff] }
 0x2ab   :  { %874 = vrot.lane.b32.xlu1 %v3033_v3, %s2268_s13  ;;  %v3100_v27 = vpop.f32.mrb[15].mxu0  ;;  %v1414_v52 = vsel %vm465_vm9, %v1406_v41, %v3019_v53  ;;  %v1423_v39 = vsel %vm474_vm10, %v1415_v47, %v3021_v54  ;;  %v1377_v18 = vsel %vm420_vm5, %v2815_v7, %v3025_v57  ;;  %v1376_v53 = vsel %vm420_vm5, %v2821_v15, %v3027_v62  ;;  %v3552_v62 = vld [vmem:[#allocation10_spill] sm:$0xff]  ;;  %v3554_v36 = vld [vmem:[#allocation12_spill] sm:$0xff] }
 0x2ac   :  { %872 = vrot.lane.b32.xlu0 %v3039_v49, %s2268_s13  ;;  %v1422_v43 = vsel %vm474_vm10, %v1414_v52, %v3023_v23  ;;  %v1385_v4 = vsel %vm429_vm6, %v1377_v18, %v3029_v0  ;;  %v1384_v57 = vsel %vm429_vm6, %v1376_v53, %v3031_v8  ;;  %v3556_v52 = vld [vmem:[#allocation3_spill] sm:$0xff] }
 0x2ad   :  { %v1393_v60 = vsel %vm438_vm7, %v1385_v4, %v3551_v59  ;;  %v1392_v0 = vsel %vm438_vm7, %v1384_v57, %v3552_v62  ;;  %v1361_v19 = vpop.permute.xlu1 %1360  ;;  %v3560_v18 = vld [vmem:[#allocation7_spill] sm:$0xff] }
 0x2ae   :  { %v2158_v12 = vpop.f32.mrb[16].mxu0  ;;  %v1401_v5 = vsel %vm447_vm4, %v1393_v60, %v3058_v58  ;;  %v1400_v8 = vsel %vm447_vm4, %v1392_v0, %v3062_v10  ;;  %v1359_v46 = vpop.permute.xlu0 %1358 }
 0x2af   :  { %v1501_v38 = vadd.f32 %v2158_v12, %v1419_v40  ;;  %906 = vrot.lane.b32.xlu1 %v3033_v3, %s2267_s4  ;;  %v1495_v14 = vpop.f32.mrb[17].mxu0  ;;  %v1409_v40 = vsel %vm456_vm8, %v1401_v5, %v1313_v25  ;;  %v1408_v26 = vsel %vm456_vm8, %v1400_v8, %v1311_v29 }
 0x2b0   :  { %v1496_v6 = vadd.f32 %v1495_v14, %v1418_v22  ;;  %904 = vrot.lane.b32.xlu0 %v3039_v49, %s2267_s4  ;;  %v1417_v32 = vsel %vm465_vm9, %v1409_v40, %v1337_v63  ;;  %v1416_v42 = vsel %vm465_vm9, %v1408_v26, %v1335_v20  ;;  %v3557_v63 = vld [vmem:[#allocation4_spill] sm:$0xff] }
 0x2b1   :  { %vm1535_vm1 = vcmp.gt.f32.partialorder %v1501_v38, 0.0  ;;  %v1543_v55 = vmul.f32 0.2, %v1501_v38  ;;  %v1425_v30 = vsel %vm474_vm10, %v1417_v32, %v1361_v19  ;;  %v1424_v33 = vsel %vm474_vm10, %v1416_v42, %v1359_v46  ;;  %v3561_v20 = vld [vmem:[#allocation8_spill] sm:$0xff] }
 0x2b2   :  { %vm1534_vm3 = vcmp.gt.f32.partialorder %v1496_v6, 0.0  ;;  %v1542_v16 = vmul.f32 0.2, %v1496_v6  ;;  %v2161_v9 = vpop.f32.mrb[18].mxu0 }
 0x2b3   :  { %v1511_v11 = vadd.f32 %v2161_v9, %v1421_v37  ;;  %938 = vrot.lane.b32.xlu1 %v3033_v3, %s2266_s3  ;;  %v1505_v54 = vpop.f32.mrb[19].mxu0  ;;  %v1551_v7 = vsel %vm1535_vm1, %v1501_v38, %v1543_v55  ;;  %v3558_v55 = vld [vmem:[#allocation5_spill] sm:$0xff]  ;;  %v3265_v9 = vpop.permute.xlu0 %1002 }
 0x2b4   :  { %v1506_v23 = vadd.f32 %v1505_v54, %v1420_v51  ;;  %936 = vrot.lane.b32.xlu0 %v3039_v49, %s2266_s3  ;;  %v1550_v15 = vsel %vm1534_vm3, %v1496_v6, %v1542_v16  ;;  %v3555_v51 = vld [vmem:[#allocation2_spill] sm:$0xff]  ;;  %v3261_v16 = vpop.permute.xlu1 %1007 }
 0x2b5   :  { %vm1537_vm12 = vcmp.gt.f32.partialorder %v1511_v11, 0.0  ;;  %v1545_v50 = vmul.f32 0.2, %v1511_v11  ;;  %v2236_v61 = vpack.c.bf16 %v1551_v7, %v1550_v15 }
 0x2b6   :  { %vm1536_vm6 = vcmp.gt.f32.partialorder %v1506_v23, 0.0  ;;  %v1544_v24 = vmul.f32 0.2, %v1506_v23  ;;  %v2164_v13 = vpop.f32.mrb[20].mxu0 }
 0x2b7   :  { %v1521_v48 = vadd.f32 %v2164_v13, %v1423_v39  ;;  %970 = vrot.lane.b32.xlu1 %v3033_v3, %s2265_s2  ;;  %v1515_v56 = vpop.f32.mrb[21].mxu0  ;;  %2237 = vmatprep.subr.bf16.mxu1 %v2236_v61  ;;  %v1553_v22 = vsel %vm1537_vm12, %v1511_v11, %v1545_v50  ;;  %v3559_v39 = vld [vmem:[#allocation6_spill] sm:$0xff]  ;;  %v3275_v53 = vpop.permute.xlu0 %1012 }
 0x2b8   :  { %v1516_v58 = vadd.f32 %v1515_v56, %v1422_v43  ;;  %968 = vrot.lane.b32.xlu0 %v3039_v49, %s2265_s2  ;;  %2239 = vmatpush3.bf16.msra.mxu1 %v2236_v61  ;;  %v1552_v10 = vsel %vm1536_vm6, %v1506_v23, %v1544_v24  ;;  %v3273_v43 = vpop.permute.xlu1 %1017 }
 0x2b9   :  { %vm1539_vm7 = vcmp.gt.f32.partialorder %v1521_v48, 0.0  ;;  %v1547_v25 = vmul.f32 0.2, %v1521_v48  ;;  %v2240_v1 = vpack.c.bf16 %v1553_v22, %v1552_v10 }
 0x2ba   :  { %vm1538_vm13 = vcmp.gt.f32.partialorder %v1516_v58, 0.0  ;;  %v1546_v28 = vmul.f32 0.2, %v1516_v58  ;;  %v2167_v31 = vpop.f32.mrb[22].mxu0 }
 0x2bb   :  { %v1531_v29 = vadd.f32 %v2167_v31, %v1425_v30  ;;  %782 = vrot.lane.b32.xlu1 %v3553_v21, %s2271_s16  ;;  %v1525_v34 = vpop.f32.mrb[23].mxu0  ;;  %2241 = vmatprep.subr.bf16.mxu1 %v2240_v1  ;;  %v1555_v35 = vsel %vm1539_vm7, %v1521_v48, %v1547_v25  ;;  %v3285_v11 = vpop.permute.xlu0 %1022 }
 0x2bc   :  { %v1526_v12 = vadd.f32 %v1525_v34, %v1424_v33  ;;  %780 = vrot.lane.b32.xlu0 %v3554_v36, %s2271_s16  ;;  %2243 = vmatpush3.bf16.msra.mxu1 %v2240_v1  ;;  %v1554_v44 = vsel %vm1538_vm13, %v1516_v58, %v1546_v28  ;;  %v3281_v4 = vpop.permute.xlu1 %1027 }
 0x2bd   :  { %vm1541_vm8 = vcmp.gt.f32.partialorder %v1531_v29, 0.0  ;;  %v1549_v38 = vmul.f32 0.2, %v1531_v29  ;;  %v2244_v14 = vpack.c.bf16 %v1555_v35, %v1554_v44 }
 0x2be   :  { %vm1540_vm9 = vcmp.gt.f32.partialorder %v1526_v12, 0.0  ;;  %v1548_v37 = vmul.f32 0.2, %v1526_v12 }
 0x2bf   :  { %814 = vrot.lane.b32.xlu1 %v3553_v21, %s2270_s15  ;;  %2245 = vmatprep.subr.bf16.mxu1 %v2244_v14  ;;  %v1557_v41 = vsel %vm1541_vm8, %v1531_v29, %v1549_v38  ;;  %v3295_v7 = vpop.permute.xlu0 %1032 }
 0x2c0   :  { %812 = vrot.lane.b32.xlu0 %v3554_v36, %s2270_s15  ;;  %2247 = vmatpush3.bf16.msra.mxu1 %v2244_v14  ;;  %v1556_v47 = vsel %vm1540_vm9, %v1526_v12, %v1548_v37  ;;  %v3293_v54 = vpop.permute.xlu1 %1037 }
 0x2c1   :  { %v2248_v6 = vpack.c.bf16 %v1557_v41, %v1556_v47 }
 0x2c3   :  { %846 = vrot.lane.b32.xlu1 %v3553_v21, %s2269_s14  ;;  %2249 = vmatprep.subr.bf16.mxu1 %v2248_v6 }
 0x2c4   :  { %844 = vrot.lane.b32.xlu0 %v3554_v36, %s2269_s14  ;;  %2251 = vmatpush3.bf16.msra.mxu1 %v2248_v6 }
 0x2c7   :  { %878 = vrot.lane.b32.xlu1 %v3553_v21, %s2268_s13  ;;  %2185 = vmatmul.mubr.msk.f32.vlgmr.msra.gmra.mrb[16].mxu1 %vm447_vm4, %v3555_v51 }
 0x2c8   :  { %876 = vrot.lane.b32.xlu0 %v3554_v36, %s2268_s13  ;;  %2187 = vmatprep.mubr.msk.f32.mxu1 %vm447_vm4, %v3556_v52 }
 0x2cb   :  { %910 = vrot.lane.b32.xlu1 %v3553_v21, %s2267_s4  ;;  %2188 = vmatmul.mubr.msk.f32.gmra.mrb[18].mxu1 %vm447_vm4, %v3557_v63 }
 0x2cc   :  { %908 = vrot.lane.b32.xlu0 %v3554_v36, %s2267_s4  ;;  %2190 = vmatprep.mubr.msk.f32.mxu1 %vm447_vm4, %v3558_v55 }
 0x2cf   :  { %942 = vrot.lane.b32.xlu1 %v3553_v21, %s2266_s3  ;;  %2191 = vmatmul.mubr.msk.f32.gmra.mrb[20].mxu1 %vm447_vm4, %v3559_v39 }
 0x2d0   :  { %940 = vrot.lane.b32.xlu0 %v3554_v36, %s2266_s3  ;;  %2193 = vmatprep.mubr.msk.f32.mxu1 %vm447_vm4, %v3560_v18 }
 0x2d3   :  { %974 = vrot.lane.b32.xlu1 %v3553_v21, %s2265_s2  ;;  %2194 = vmatmul.mubr.msk.f32.gmra.mrb[22].mxu1 %vm447_vm4, %v3561_v20 }
 0x2d4   :  { %972 = vrot.lane.b32.xlu0 %v3554_v36, %s2265_s2 }
 0x2d7   :  { %786 = vrot.lane.b32.xlu1 %v3064_v2, %s2271_s16 }
 0x2d8   :  { %784 = vrot.lane.b32.xlu0 %v3070_v17, %s2271_s16 }
 0x2db   :  { %818 = vrot.lane.b32.xlu1 %v3064_v2, %s2270_s15 }
 0x2dc   :  { %816 = vrot.lane.b32.xlu0 %v3070_v17, %s2270_s15 }
 0x2df   :  { %850 = vrot.lane.b32.xlu1 %v3064_v2, %s2269_s14 }
 0x2e0   :  { %848 = vrot.lane.b32.xlu0 %v3070_v17, %s2269_s14 }
 0x2e3   :  { %882 = vrot.lane.b32.xlu1 %v3064_v2, %s2268_s13 }
 0x2e4   :  { %880 = vrot.lane.b32.xlu0 %v3070_v17, %s2268_s13 }
 0x2e7   :  { %914 = vrot.lane.b32.xlu1 %v3064_v2, %s2267_s4 }
 0x2e8   :  { %912 = vrot.lane.b32.xlu0 %v3070_v17, %s2267_s4 }
 0x2eb   :  { %946 = vrot.lane.b32.xlu1 %v3064_v2, %s2266_s3 }
 0x2ec   :  { %944 = vrot.lane.b32.xlu0 %v3070_v17, %s2266_s3 }
 0x2ef   :  { %978 = vrot.lane.b32.xlu1 %v3064_v2, %s2265_s2 }
 0x2f0   :  { %976 = vrot.lane.b32.xlu0 %v3070_v17, %s2265_s2 }
 0x2f3   :  { %790 = vrot.lane.b32.xlu1 %v3088_v45, %s2271_s16 }
 0x2f4   :  { %788 = vrot.lane.b32.xlu0 %v3100_v27, %s2271_s16 }
 0x2f7   :  { %822 = vrot.lane.b32.xlu1 %v3088_v45, %s2270_s15 }
 0x2f8   :  { %820 = vrot.lane.b32.xlu0 %v3100_v27, %s2270_s15 }
 0x2fb   :  { %854 = vrot.lane.b32.xlu1 %v3088_v45, %s2269_s14 }
 0x2fc   :  { %852 = vrot.lane.b32.xlu0 %v3100_v27, %s2269_s14 }
 0x2ff   :  { %886 = vrot.lane.b32.xlu1 %v3088_v45, %s2268_s13 }
 0x300   :  { %884 = vrot.lane.b32.xlu0 %v3100_v27, %s2268_s13 }
 0x303   :  { %918 = vrot.lane.b32.xlu1 %v3088_v45, %s2267_s4 }
 0x304   :  { %916 = vrot.lane.b32.xlu0 %v3100_v27, %s2267_s4 }
 0x307   :  { %950 = vrot.lane.b32.xlu1 %v3088_v45, %s2266_s3 }
 0x308   :  { %948 = vrot.lane.b32.xlu0 %v3100_v27, %s2266_s3 }
 0x30b   :  { %982 = vrot.lane.b32.xlu1 %v3088_v45, %s2265_s2 }
 0x30c   :  { %980 = vrot.lane.b32.xlu0 %v3100_v27, %s2265_s2 }
 0x311   :  { %v779_v57 = vpop.permute.xlu1 %778 }
 0x312   :  { %v777_v59 = vpop.permute.xlu0 %776  ;;  %v801_v50 = vmax.f32 %v3033_v3, %v779_v57 }
 0x313   :  { %v800_v5 = vmax.f32 %v3039_v49, %v777_v59 }
 0x315   :  { %v811_v60 = vpop.permute.xlu1 %810 }
 0x316   :  { %v809_v23 = vpop.permute.xlu0 %808  ;;  %v833_v8 = vmax.f32 %v801_v50, %v811_v60 }
 0x317   :  { %v832_v24 = vmax.f32 %v800_v5, %v809_v23 }
 0x319   :  { %v843_v15 = vpop.permute.xlu1 %842 }
 0x31a   :  { %v841_v62 = vpop.permute.xlu0 %840  ;;  %v865_v40 = vmax.f32 %v833_v8, %v843_v15 }
 0x31b   :  { %v864_v48 = vmax.f32 %v832_v24, %v841_v62 }
 0x31d   :  { %v875_v0 = vpop.permute.xlu1 %874 }
 0x31e   :  { %v873_v61 = vpop.permute.xlu0 %872  ;;  %v897_v56 = vmax.f32 %v865_v40, %v875_v0 }
 0x31f   :  { %v896_v22 = vmax.f32 %v864_v48, %v873_v61 }
 0x321   :  { %v907_v13 = vpop.permute.xlu1 %906 }
 0x322   :  { %v905_v19 = vpop.permute.xlu0 %904  ;;  %v929_v46 = vmax.f32 %v897_v56, %v907_v13 }
 0x323   :  { %v928_v10 = vmax.f32 %v896_v22, %v905_v19 }
 0x325   :  { %v939_v26 = vpop.permute.xlu1 %938 }
 0x326   :  { %v937_v58 = vpop.permute.xlu0 %936  ;;  %v961_v32 = vmax.f32 %v929_v46, %v939_v26 }
 0x327   :  { %v960_v25 = vmax.f32 %v928_v10, %v937_v58 }
 0x329   :  { %v971_v1 = vpop.permute.xlu1 %970 }
 0x32a   :  { %v993_v42 = vmax.f32 %v961_v32, %v971_v1  ;;  %v969_v3 = vpop.permute.xlu0 %968 }
 0x32b   :  { %v992_v28 = vmax.f32 %v960_v25, %v969_v3 }
 0x32c   :  { %v1041_v49 = vadd.f32 %v3261_v16, %v993_v42 }
 0x32d   :  { %v1040_v30 = vadd.f32 %v3265_v9, %v992_v28  ;;  %v783_v31 = vpop.permute.xlu1 %782 }
 0x32e   :  { %vm1049_vm4 = vcmp.gt.f32.partialorder %v1041_v49, 0.0  ;;  %v1057_v29 = vmul.f32 0.2, %v1041_v49  ;;  %v781_v33 = vpop.permute.xlu0 %780  ;;  %v803_v47 = vmax.f32 %v3553_v21, %v783_v31 }
 0x32f   :  { %vm1048_vm10 = vcmp.gt.f32.partialorder %v1040_v30, 0.0  ;;  %v1056_v34 = vmul.f32 0.2, %v1040_v30  ;;  %v802_v51 = vmax.f32 %v3554_v36, %v781_v33 }
 0x330   :  { %v1065_v35 = vsel %vm1049_vm4, %v1041_v49, %v1057_v29 }
 0x331   :  { %1073 = vst.msk [vmem:[%s3528_s7 + $0x8] sm:$0xff] %vm420_vm5, %v1065_v35  ;;  %v1064_v12 = vsel %vm1048_vm10, %v1040_v30, %v1056_v34  ;;  %v815_v44 = vpop.permute.xlu1 %814 }
 0x332   :  { %1072 = vst.msk [vmem:[%s3528_s7] sm:$0xff] %vm420_vm5, %v1064_v12  ;;  %v813_v38 = vpop.permute.xlu0 %812  ;;  %v835_v52 = vmax.f32 %v803_v47, %v815_v44 }
 0x333   :  { %v834_v63 = vmax.f32 %v802_v51, %v813_v38 }
 0x335   :  { %v847_v14 = vpop.permute.xlu1 %846 }
 0x336   :  { %v845_v37 = vpop.permute.xlu0 %844  ;;  %v867_v39 = vmax.f32 %v835_v52, %v847_v14 }
 0x337   :  { %v866_v20 = vmax.f32 %v834_v63, %v845_v37 }
 0x339   :  { %v879_v41 = vpop.permute.xlu1 %878 }
 0x33a   :  { %v877_v6 = vpop.permute.xlu0 %876  ;;  %v899_v57 = vmax.f32 %v867_v39, %v879_v41 }
 0x33b   :  { %v898_v59 = vmax.f32 %v866_v20, %v877_v6 }
 0x33d   :  { %v911_v55 = vpop.permute.xlu1 %910 }
 0x33e   :  { %v909_v18 = vpop.permute.xlu0 %908  ;;  %v931_v23 = vmax.f32 %v899_v57, %v911_v55 }
 0x33f   :  { %v930_v62 = vmax.f32 %v898_v59, %v909_v18 }
 0x341   :  { %v943_v60 = vpop.permute.xlu1 %942 }
 0x342   :  { %v941_v15 = vpop.permute.xlu0 %940  ;;  %v963_v0 = vmax.f32 %v931_v23, %v943_v60 }
 0x343   :  { %v962_v50 = vmax.f32 %v930_v62, %v941_v15 }
 0x345   :  { %v975_v61 = vpop.permute.xlu1 %974 }
 0x346   :  { %v995_v5 = vmax.f32 %v963_v0, %v975_v61  ;;  %v973_v21 = vpop.permute.xlu0 %972 }
 0x347   :  { %v994_v8 = vmax.f32 %v962_v50, %v973_v21 }
 0x348   :  { %v1043_v36 = vadd.f32 %v3273_v43, %v995_v5 }
 0x349   :  { %v1042_v24 = vadd.f32 %v3275_v53, %v994_v8  ;;  %v787_v13 = vpop.permute.xlu1 %786 }
 0x34a   :  { %vm1051_vm14 = vcmp.gt.f32.partialorder %v1043_v36, 0.0  ;;  %v1059_v40 = vmul.f32 0.2, %v1043_v36  ;;  %v785_v19 = vpop.permute.xlu0 %784  ;;  %v805_v25 = vmax.f32 %v3064_v2, %v787_v13 }
 0x34b   :  { %vm1050_vm15 = vcmp.gt.f32.partialorder %v1042_v24, 0.0  ;;  %v1058_v48 = vmul.f32 0.2, %v1042_v24  ;;  %v804_v42 = vmax.f32 %v3070_v17, %v785_v19 }
 0x34c   :  { %v1067_v56 = vsel %vm1051_vm14, %v1043_v36, %v1059_v40 }
 0x34d   :  { %1075 = vst.msk [vmem:[%s3528_s7 + $0x18] sm:$0xff] %vm420_vm5, %v1067_v56  ;;  %v1066_v22 = vsel %vm1050_vm15, %v1042_v24, %v1058_v48  ;;  %v819_v26 = vpop.permute.xlu1 %818 }
 0x34e   :  { %1074 = vst.msk [vmem:[%s3528_s7 + $0x10] sm:$0xff] %vm420_vm5, %v1066_v22  ;;  %v817_v46 = vpop.permute.xlu0 %816  ;;  %v837_v3 = vmax.f32 %v805_v25, %v819_v26 }
 0x34f   :  { %v836_v28 = vmax.f32 %v804_v42, %v817_v46 }
 0x351   :  { %v851_v58 = vpop.permute.xlu1 %850 }
 0x352   :  { %v849_v10 = vpop.permute.xlu0 %848  ;;  %v869_v30 = vmax.f32 %v837_v3, %v851_v58 }
 0x353   :  { %v868_v29 = vmax.f32 %v836_v28, %v849_v10 }
 0x355   :  { %v883_v32 = vpop.permute.xlu1 %882 }
 0x356   :  { %v881_v1 = vpop.permute.xlu0 %880  ;;  %v901_v33 = vmax.f32 %v869_v30, %v883_v32 }
 0x357   :  { %v900_v34 = vmax.f32 %v868_v29, %v881_v1 }
 0x359   :  { %v915_v49 = vpop.permute.xlu1 %914 }
 0x35a   :  { %v913_v31 = vpop.permute.xlu0 %912  ;;  %v933_v12 = vmax.f32 %v901_v33, %v915_v49 }
 0x35b   :  { %v932_v38 = vmax.f32 %v900_v34, %v913_v31 }
 0x35d   :  { %v947_v35 = vpop.permute.xlu1 %946 }
 0x35e   :  { %v945_v44 = vpop.permute.xlu0 %944  ;;  %v965_v14 = vmax.f32 %v933_v12, %v947_v35 }
 0x35f   :  { %v964_v37 = vmax.f32 %v932_v38, %v945_v44 }
 0x361   :  { %v979_v41 = vpop.permute.xlu1 %978 }
 0x362   :  { %v997_v47 = vmax.f32 %v965_v14, %v979_v41  ;;  %v977_v2 = vpop.permute.xlu0 %976 }
 0x363   :  { %v996_v6 = vmax.f32 %v964_v37, %v977_v2 }
 0x364   :  { %v1045_v17 = vadd.f32 %v3281_v4, %v997_v47 }
 0x365   :  { %v1044_v51 = vadd.f32 %v3285_v11, %v996_v6  ;;  %v791_v52 = vpop.permute.xlu1 %790 }
 0x366   :  { %vm1053_vm0 = vcmp.gt.f32.partialorder %v1045_v17, 0.0  ;;  %v1061_v63 = vmul.f32 0.2, %v1045_v17  ;;  %v789_v55 = vpop.permute.xlu0 %788  ;;  %v807_v62 = vmax.f32 %v3088_v45, %v791_v52 }
 0x367   :  { %vm1052_vm2 = vcmp.gt.f32.partialorder %v1044_v51, 0.0  ;;  %v1060_v39 = vmul.f32 0.2, %v1044_v51  ;;  %v806_v50 = vmax.f32 %v3100_v27, %v789_v55 }
 0x368   :  { %v1069_v18 = vsel %vm1053_vm0, %v1045_v17, %v1061_v63 }
 0x369   :  { %1077 = vst.msk [vmem:[%s3528_s7 + $0x28] sm:$0xff] %vm420_vm5, %v1069_v18  ;;  %v1068_v20 = vsel %vm1052_vm2, %v1044_v51, %v1060_v39  ;;  %v823_v57 = vpop.permute.xlu1 %822 }
 0x36a   :  { %1076 = vst.msk [vmem:[%s3528_s7 + $0x20] sm:$0xff] %vm420_vm5, %v1068_v20  ;;  %v821_v59 = vpop.permute.xlu0 %820  ;;  %v839_v61 = vmax.f32 %v807_v62, %v823_v57 }
 0x36b   :  { %v838_v5 = vmax.f32 %v806_v50, %v821_v59 }
 0x36d   :  { %v855_v60 = vpop.permute.xlu1 %854 }
 0x36e   :  { %v853_v23 = vpop.permute.xlu0 %852  ;;  %v871_v8 = vmax.f32 %v839_v61, %v855_v60 }
 0x36f   :  { %v870_v24 = vmax.f32 %v838_v5, %v853_v23 }
 0x371   :  { %v887_v15 = vpop.permute.xlu1 %886 }
 0x372   :  { %v885_v0 = vpop.permute.xlu0 %884  ;;  %v903_v13 = vmax.f32 %v871_v8, %v887_v15 }
 0x373   :  { %v902_v40 = vmax.f32 %v870_v24, %v885_v0 }
 0x375   :  { %v919_v21 = vpop.permute.xlu1 %918 }
 0x376   :  { %v917_v36 = vpop.permute.xlu0 %916  ;;  %v935_v48 = vmax.f32 %v903_v13, %v919_v21 }
 0x377   :  { %v934_v22 = vmax.f32 %v902_v40, %v917_v36 }
 0x379   :  { %v951_v19 = vpop.permute.xlu1 %950 }
 0x37a   :  { %v949_v56 = vpop.permute.xlu0 %948  ;;  %v967_v26 = vmax.f32 %v935_v48, %v951_v19 }
 0x37b   :  { %v966_v46 = vmax.f32 %v934_v22, %v949_v56 }
 0x37d   :  { %v983_v58 = vpop.permute.xlu1 %982 }
 0x37e   :  { %v999_v10 = vmax.f32 %v967_v26, %v983_v58  ;;  %v981_v45 = vpop.permute.xlu0 %980 }
 0x37f   :  { %v998_v32 = vmax.f32 %v966_v46, %v981_v45 }
 0x380   :  { %v1047_v27 = vadd.f32 %v3293_v54, %v999_v10 }
 0x381   :  { %v1046_v25 = vadd.f32 %v3295_v7, %v998_v32 }
 0x382   :  { %vm1055_vm11 = vcmp.gt.f32.partialorder %v1047_v27, 0.0  ;;  %v1063_v1 = vmul.f32 0.2, %v1047_v27 }
 0x383   :  { %vm1054_vm1 = vcmp.gt.f32.partialorder %v1046_v25, 0.0  ;;  %v1062_v42 = vmul.f32 0.2, %v1046_v25 }
 0x384   :  { %v1071_v3 = vsel %vm1055_vm11, %v1047_v27, %v1063_v1 }
 0x385   :  { %1079 = vst.msk [vmem:[%s3528_s7 + $0x38] sm:$0xff] %vm420_vm5, %v1071_v3  ;;  %v1070_v28 = vsel %vm1054_vm1, %v1046_v25, %v1062_v42 }
 0x386   :  { %1078 = vst.msk [vmem:[%s3528_s7 + $0x30] sm:$0xff] %vm420_vm5, %v1070_v28 }
 0x39a   :  { %v3345_v49 = vpop.f32.mrb[16].mxu1 }
 0x39b   :  { %1673 = vrot.lane.b32.xlu1 %v3345_v49, %s2271_s16  ;;  %v3349_v30 = vpop.f32.mrb[17].mxu1 }
 0x39c   :  { %1671 = vrot.lane.b32.xlu0 %v3349_v30, %s2271_s16 }
 0x39e   :  { %v3353_v31 = vpop.f32.mrb[18].mxu1 }
 0x39f   :  { %1705 = vrot.lane.b32.xlu1 %v3345_v49, %s2270_s15  ;;  %v3357_v29 = vpop.f32.mrb[19].mxu1 }
 0x3a0   :  { %1703 = vrot.lane.b32.xlu0 %v3349_v30, %s2270_s15 }
 0x3a2   :  { %v3361_v33 = vpop.f32.mrb[20].mxu1 }
 0x3a3   :  { %1737 = vrot.lane.b32.xlu1 %v3345_v49, %s2269_s14  ;;  %v3365_v34 = vpop.f32.mrb[21].mxu1 }
 0x3a4   :  { %1735 = vrot.lane.b32.xlu0 %v3349_v30, %s2269_s14 }
 0x3a6   :  { %v3369_v35 = vpop.f32.mrb[22].mxu1 }
 0x3a7   :  { %1769 = vrot.lane.b32.xlu1 %v3345_v49, %s2268_s13  ;;  %v3373_v12 = vpop.f32.mrb[23].mxu1 }
 0x3a8   :  { %1767 = vrot.lane.b32.xlu0 %v3349_v30, %s2268_s13 }
 0x3ab   :  { %1801 = vrot.lane.b32.xlu1 %v3345_v49, %s2267_s4 }
 0x3ac   :  { %1799 = vrot.lane.b32.xlu0 %v3349_v30, %s2267_s4 }
 0x3af   :  { %1833 = vrot.lane.b32.xlu1 %v3345_v49, %s2266_s3 }
 0x3b0   :  { %1831 = vrot.lane.b32.xlu0 %v3349_v30, %s2266_s3 }
 0x3b3   :  { %1865 = vrot.lane.b32.xlu1 %v3345_v49, %s2265_s2 }
 0x3b4   :  { %1863 = vrot.lane.b32.xlu0 %v3349_v30, %s2265_s2 }
 0x3b7   :  { %1677 = vrot.lane.b32.xlu1 %v3353_v31, %s2271_s16 }
 0x3b8   :  { %1675 = vrot.lane.b32.xlu0 %v3357_v29, %s2271_s16 }
 0x3bb   :  { %1709 = vrot.lane.b32.xlu1 %v3353_v31, %s2270_s15 }
 0x3bc   :  { %1707 = vrot.lane.b32.xlu0 %v3357_v29, %s2270_s15 }
 0x3bf   :  { %1741 = vrot.lane.b32.xlu1 %v3353_v31, %s2269_s14 }
 0x3c0   :  { %1739 = vrot.lane.b32.xlu0 %v3357_v29, %s2269_s14 }
 0x3c3   :  { %1773 = vrot.lane.b32.xlu1 %v3353_v31, %s2268_s13 }
 0x3c4   :  { %1771 = vrot.lane.b32.xlu0 %v3357_v29, %s2268_s13 }
 0x3c7   :  { %1805 = vrot.lane.b32.xlu1 %v3353_v31, %s2267_s4 }
 0x3c8   :  { %1803 = vrot.lane.b32.xlu0 %v3357_v29, %s2267_s4 }
 0x3cb   :  { %1837 = vrot.lane.b32.xlu1 %v3353_v31, %s2266_s3 }
 0x3cc   :  { %1835 = vrot.lane.b32.xlu0 %v3357_v29, %s2266_s3 }
 0x3cf   :  { %1869 = vrot.lane.b32.xlu1 %v3353_v31, %s2265_s2 }
 0x3d0   :  { %1867 = vrot.lane.b32.xlu0 %v3357_v29, %s2265_s2 }
 0x3d3   :  { %1681 = vrot.lane.b32.xlu1 %v3361_v33, %s2271_s16 }
 0x3d4   :  { %1679 = vrot.lane.b32.xlu0 %v3365_v34, %s2271_s16 }
 0x3d7   :  { %1713 = vrot.lane.b32.xlu1 %v3361_v33, %s2270_s15 }
 0x3d8   :  { %1711 = vrot.lane.b32.xlu0 %v3365_v34, %s2270_s15 }
 0x3db   :  { %1745 = vrot.lane.b32.xlu1 %v3361_v33, %s2269_s14 }
 0x3dc   :  { %1743 = vrot.lane.b32.xlu0 %v3365_v34, %s2269_s14 }
 0x3df   :  { %1777 = vrot.lane.b32.xlu1 %v3361_v33, %s2268_s13 }
 0x3e0   :  { %1775 = vrot.lane.b32.xlu0 %v3365_v34, %s2268_s13 }
 0x3e3   :  { %1809 = vrot.lane.b32.xlu1 %v3361_v33, %s2267_s4 }
 0x3e4   :  { %1807 = vrot.lane.b32.xlu0 %v3365_v34, %s2267_s4 }
 0x3e7   :  { %1841 = vrot.lane.b32.xlu1 %v3361_v33, %s2266_s3 }
 0x3e8   :  { %1839 = vrot.lane.b32.xlu0 %v3365_v34, %s2266_s3 }
 0x3eb   :  { %1873 = vrot.lane.b32.xlu1 %v3361_v33, %s2265_s2 }
 0x3ec   :  { %1871 = vrot.lane.b32.xlu0 %v3365_v34, %s2265_s2 }
 0x3ef   :  { %1685 = vrot.lane.b32.xlu1 %v3369_v35, %s2271_s16 }
 0x3f0   :  { %1683 = vrot.lane.b32.xlu0 %v3373_v12, %s2271_s16 }
 0x3f3   :  { %1717 = vrot.lane.b32.xlu1 %v3369_v35, %s2270_s15 }
 0x3f4   :  { %1715 = vrot.lane.b32.xlu0 %v3373_v12, %s2270_s15 }
 0x3f7   :  { %1749 = vrot.lane.b32.xlu1 %v3369_v35, %s2269_s14 }
 0x3f8   :  { %1747 = vrot.lane.b32.xlu0 %v3373_v12, %s2269_s14 }
 0x3fb   :  { %1781 = vrot.lane.b32.xlu1 %v3369_v35, %s2268_s13 }
 0x3fc   :  { %1779 = vrot.lane.b32.xlu0 %v3373_v12, %s2268_s13 }
 0x3ff   :  { %1813 = vrot.lane.b32.xlu1 %v3369_v35, %s2267_s4 }
 0x400   :  { %1811 = vrot.lane.b32.xlu0 %v3373_v12, %s2267_s4 }
 0x403   :  { %1845 = vrot.lane.b32.xlu1 %v3369_v35, %s2266_s3 }
 0x404   :  { %1843 = vrot.lane.b32.xlu0 %v3373_v12, %s2266_s3 }
 0x407   :  { %1877 = vrot.lane.b32.xlu1 %v3369_v35, %s2265_s2 }
 0x408   :  { %1875 = vrot.lane.b32.xlu0 %v3373_v12, %s2265_s2 }
 0x40d   :  { %v1674_v44 = vpop.permute.xlu1 %1673 }
 0x40e   :  { %v1672_v38 = vpop.permute.xlu0 %1671  ;;  %v1696_v6 = vmax.f32 %v3345_v49, %v1674_v44 }
 0x40f   :  { %v1695_v51 = vmax.f32 %v3349_v30, %v1672_v38 }
 0x411   :  { %v1706_v14 = vpop.permute.xlu1 %1705 }
 0x412   :  { %v1704_v37 = vpop.permute.xlu0 %1703  ;;  %v1728_v52 = vmax.f32 %v1696_v6, %v1706_v14 }
 0x413   :  { %v1727_v63 = vmax.f32 %v1695_v51, %v1704_v37 }
 0x415   :  { %v1738_v41 = vpop.permute.xlu1 %1737 }
 0x416   :  { %v1736_v47 = vpop.permute.xlu0 %1735  ;;  %v1760_v39 = vmax.f32 %v1728_v52, %v1738_v41 }
 0x417   :  { %v1759_v20 = vmax.f32 %v1727_v63, %v1736_v47 }
 0x419   :  { %v1770_v2 = vpop.permute.xlu1 %1769 }
 0x41a   :  { %v1768_v17 = vpop.permute.xlu0 %1767  ;;  %v1792_v57 = vmax.f32 %v1760_v39, %v1770_v2 }
 0x41b   :  { %v1791_v59 = vmax.f32 %v1759_v20, %v1768_v17 }
 0x41d   :  { %v1802_v55 = vpop.permute.xlu1 %1801 }
 0x41e   :  { %v1800_v18 = vpop.permute.xlu0 %1799  ;;  %v1824_v23 = vmax.f32 %v1792_v57, %v1802_v55 }
 0x41f   :  { %v1823_v62 = vmax.f32 %v1791_v59, %v1800_v18 }
 0x421   :  { %v1834_v60 = vpop.permute.xlu1 %1833 }
 0x422   :  { %v1832_v15 = vpop.permute.xlu0 %1831  ;;  %v1856_v0 = vmax.f32 %v1824_v23, %v1834_v60 }
 0x423   :  { %v1855_v50 = vmax.f32 %v1823_v62, %v1832_v15 }
 0x425   :  { %v1866_v61 = vpop.permute.xlu1 %1865 }
 0x426   :  { %v1888_v5 = vmax.f32 %v1856_v0, %v1866_v61  ;;  %v1864_v21 = vpop.permute.xlu0 %1863 }
 0x427   :  { %v1887_v8 = vmax.f32 %v1855_v50, %v1864_v21 }
 0x428   :  { %v1896_v36 = vadd.f32 %v1888_v5, %v3261_v16 }
 0x429   :  { %v1895_v24 = vadd.f32 %v1887_v8, %v3265_v9  ;;  %v1678_v13 = vpop.permute.xlu1 %1677 }
 0x42a   :  { %vm1904_vm3 = vcmp.gt.f32.partialorder %v1896_v36, 0.0  ;;  %v1912_v40 = vmul.f32 0.2, %v1896_v36  ;;  %v1676_v19 = vpop.permute.xlu0 %1675  ;;  %v1698_v10 = vmax.f32 %v3353_v31, %v1678_v13 }
 0x42b   :  { %vm1903_vm12 = vcmp.gt.f32.partialorder %v1895_v24, 0.0  ;;  %v1911_v48 = vmul.f32 0.2, %v1895_v24  ;;  %v1697_v32 = vmax.f32 %v3357_v29, %v1676_v19 }
 0x42c   :  { %v1920_v56 = vsel %vm1904_vm3, %v1896_v36, %v1912_v40 }
 0x42d   :  { %1997 = vst.msk [vmem:[%s3528_s7 + $0x48] sm:$0xff] %vm420_vm5, %v1920_v56  ;;  %v1919_v22 = vsel %vm1903_vm12, %v1895_v24, %v1911_v48  ;;  %v1710_v26 = vpop.permute.xlu1 %1709 }
 0x42e   :  { %1996 = vst.msk [vmem:[%s3528_s7 + $0x40] sm:$0xff] %vm420_vm5, %v1919_v22  ;;  %v1708_v16 = vpop.permute.xlu0 %1707  ;;  %v1730_v27 = vmax.f32 %v1698_v10, %v1710_v26 }
 0x42f   :  { %v1729_v25 = vmax.f32 %v1697_v32, %v1708_v16 }
 0x431   :  { %v1742_v9 = vpop.permute.xlu1 %1741 }
 0x432   :  { %v1740_v46 = vpop.permute.xlu0 %1739  ;;  %v1762_v42 = vmax.f32 %v1730_v27, %v1742_v9 }
 0x433   :  { %v1761_v28 = vmax.f32 %v1729_v25, %v1740_v46 }
 0x435   :  { %v1774_v58 = vpop.permute.xlu1 %1773 }
 0x436   :  { %v1772_v45 = vpop.permute.xlu0 %1771  ;;  %v1794_v49 = vmax.f32 %v1762_v42, %v1774_v58 }
 0x437   :  { %v1793_v30 = vmax.f32 %v1761_v28, %v1772_v45 }
 0x439   :  { %v1806_v1 = vpop.permute.xlu1 %1805 }
 0x43a   :  { %v1804_v3 = vpop.permute.xlu0 %1803  ;;  %v1826_v38 = vmax.f32 %v1794_v49, %v1806_v1 }
 0x43b   :  { %v1825_v37 = vmax.f32 %v1793_v30, %v1804_v3 }
 0x43d   :  { %v1838_v44 = vpop.permute.xlu1 %1837 }
 0x43e   :  { %v1836_v14 = vpop.permute.xlu0 %1835  ;;  %v1858_v41 = vmax.f32 %v1826_v38, %v1838_v44 }
 0x43f   :  { %v1857_v47 = vmax.f32 %v1825_v37, %v1836_v14 }
 0x441   :  { %v1870_v2 = vpop.permute.xlu1 %1869 }
 0x442   :  { %v1890_v6 = vmax.f32 %v1858_v41, %v1870_v2  ;;  %v1868_v31 = vpop.permute.xlu0 %1867 }
 0x443   :  { %v1889_v17 = vmax.f32 %v1857_v47, %v1868_v31 }
 0x444   :  { %v1898_v29 = vadd.f32 %v1890_v6, %v3273_v43 }
 0x445   :  { %v1897_v51 = vadd.f32 %v1889_v17, %v3275_v53  ;;  %v1682_v52 = vpop.permute.xlu1 %1681 }
 0x446   :  { %vm1906_vm6 = vcmp.gt.f32.partialorder %v1898_v29, 0.0  ;;  %v1914_v63 = vmul.f32 0.2, %v1898_v29  ;;  %v1680_v55 = vpop.permute.xlu0 %1679  ;;  %v1700_v23 = vmax.f32 %v3361_v33, %v1682_v52 }
 0x447   :  { %vm1905_vm7 = vcmp.gt.f32.partialorder %v1897_v51, 0.0  ;;  %v1913_v39 = vmul.f32 0.2, %v1897_v51  ;;  %v1699_v62 = vmax.f32 %v3365_v34, %v1680_v55 }
 0x448   :  { %v1922_v18 = vsel %vm1906_vm6, %v1898_v29, %v1914_v63 }
 0x449   :  { %1999 = vst.msk [vmem:[%s3528_s7 + $0x58] sm:$0xff] %vm420_vm5, %v1922_v18  ;;  %v1921_v20 = vsel %vm1905_vm7, %v1897_v51, %v1913_v39  ;;  %v1714_v57 = vpop.permute.xlu1 %1713 }
 0x44a   :  { %1998 = vst.msk [vmem:[%s3528_s7 + $0x50] sm:$0xff] %vm420_vm5, %v1921_v20  ;;  %v1712_v43 = vpop.permute.xlu0 %1711  ;;  %v1732_v0 = vmax.f32 %v1700_v23, %v1714_v57 }
 0x44b   :  { %v1731_v50 = vmax.f32 %v1699_v62, %v1712_v43 }
 0x44d   :  { %v1746_v53 = vpop.permute.xlu1 %1745 }
 0x44e   :  { %v1744_v59 = vpop.permute.xlu0 %1743  ;;  %v1764_v5 = vmax.f32 %v1732_v0, %v1746_v53 }
 0x44f   :  { %v1763_v8 = vmax.f32 %v1731_v50, %v1744_v59 }
 0x451   :  { %v1778_v60 = vpop.permute.xlu1 %1777 }
 0x452   :  { %v1776_v15 = vpop.permute.xlu0 %1775  ;;  %v1796_v36 = vmax.f32 %v1764_v5, %v1778_v60 }
 0x453   :  { %v1795_v24 = vmax.f32 %v1763_v8, %v1776_v15 }
 0x455   :  { %v1810_v61 = vpop.permute.xlu1 %1809 }
 0x456   :  { %v1808_v21 = vpop.permute.xlu0 %1807  ;;  %v1828_v40 = vmax.f32 %v1796_v36, %v1810_v61 }
 0x457   :  { %v1827_v48 = vmax.f32 %v1795_v24, %v1808_v21 }
 0x459   :  { %v1842_v13 = vpop.permute.xlu1 %1841 }
 0x45a   :  { %v1840_v19 = vpop.permute.xlu0 %1839  ;;  %v1860_v56 = vmax.f32 %v1828_v40, %v1842_v13 }
 0x45b   :  { %v1859_v22 = vmax.f32 %v1827_v48, %v1840_v19 }
 0x45d   :  { %v1874_v26 = vpop.permute.xlu1 %1873 }
 0x45e   :  { %v1892_v16 = vmax.f32 %v1860_v56, %v1874_v26  ;;  %v1872_v33 = vpop.permute.xlu0 %1871 }
 0x45f   :  { %v1891_v9 = vmax.f32 %v1859_v22, %v1872_v33 }
 0x460   :  { %v1900_v34 = vadd.f32 %v1892_v16, %v3281_v4 }
 0x461   :  { %v1899_v46 = vadd.f32 %v1891_v9, %v3285_v11  ;;  %v1686_v58 = vpop.permute.xlu1 %1685 }
 0x462   :  { %vm1908_vm13 = vcmp.gt.f32.partialorder %v1900_v34, 0.0  ;;  %v1916_v10 = vmul.f32 0.2, %v1900_v34  ;;  %v1684_v45 = vpop.permute.xlu0 %1683  ;;  %v1702_v28 = vmax.f32 %v3369_v35, %v1686_v58 }
 0x463   :  { %vm1907_vm8 = vcmp.gt.f32.partialorder %v1899_v46, 0.0  ;;  %v1915_v32 = vmul.f32 0.2, %v1899_v46  ;;  %v1701_v30 = vmax.f32 %v3373_v12, %v1684_v45 }
 0x464   :  { %v1924_v27 = vsel %vm1908_vm13, %v1900_v34, %v1916_v10 }
 0x465   :  { %2001 = vst.msk [vmem:[%s3528_s7 + $0x68] sm:$0xff] %vm420_vm5, %v1924_v27  ;;  %v1923_v25 = vsel %vm1907_vm8, %v1899_v46, %v1915_v32  ;;  %v1718_v1 = vpop.permute.xlu1 %1717 }
 0x466   :  { %2000 = vst.msk [vmem:[%s3528_s7 + $0x60] sm:$0xff] %vm420_vm5, %v1923_v25  ;;  %v1716_v4 = vpop.permute.xlu0 %1715  ;;  %v1734_v44 = vmax.f32 %v1702_v28, %v1718_v1 }
 0x467   :  { %v1733_v38 = vmax.f32 %v1701_v30, %v1716_v4 }
 0x469   :  { %v1750_v11 = vpop.permute.xlu1 %1749 }
 0x46a   :  { %v1748_v42 = vpop.permute.xlu0 %1747  ;;  %v1766_v37 = vmax.f32 %v1734_v44, %v1750_v11 }
 0x46b   :  { %v1765_v47 = vmax.f32 %v1733_v38, %v1748_v42 }
 0x46d   :  { %v1782_v3 = vpop.permute.xlu1 %1781 }
 0x46e   :  { %v1780_v49 = vpop.permute.xlu0 %1779  ;;  %v1798_v2 = vmax.f32 %v1766_v37, %v1782_v3 }
 0x46f   :  { %v1797_v6 = vmax.f32 %v1765_v47, %v1780_v49 }
 0x471   :  { %v1814_v14 = vpop.permute.xlu1 %1813 }
 0x472   :  { %v1812_v41 = vpop.permute.xlu0 %1811  ;;  %v1830_v17 = vmax.f32 %v1798_v2, %v1814_v14 }
 0x473   :  { %v1829_v51 = vmax.f32 %v1797_v6, %v1812_v41 }
 0x475   :  { %v1846_v31 = vpop.permute.xlu1 %1845 }
 0x476   :  { %v1844_v29 = vpop.permute.xlu0 %1843  ;;  %v1862_v52 = vmax.f32 %v1830_v17, %v1846_v31 }
 0x477   :  { %v1861_v63 = vmax.f32 %v1829_v51, %v1844_v29 }
 0x479   :  { %v1878_v55 = vpop.permute.xlu1 %1877 }
 0x47a   :  { %v1894_v39 = vmax.f32 %v1862_v52, %v1878_v55  ;;  %v1876_v35 = vpop.permute.xlu0 %1875 }
 0x47b   :  { %v1893_v18 = vmax.f32 %v1861_v63, %v1876_v35 }
 0x47c   :  { %v1902_v12 = vadd.f32 %v1894_v39, %v3293_v54 }
 0x47d   :  { %v1901_v20 = vadd.f32 %v1893_v18, %v3295_v7 }
 0x47e   :  { %vm1910_vm9 = vcmp.gt.f32.partialorder %v1902_v12, 0.0  ;;  %v1918_v57 = vmul.f32 0.2, %v1902_v12 }
 0x47f   :  { %vm1909_vm4 = vcmp.gt.f32.partialorder %v1901_v20, 0.0  ;;  %v1917_v43 = vmul.f32 0.2, %v1901_v20 }
 0x480   :  { %v1926_v53 = vsel %vm1910_vm9, %v1902_v12, %v1918_v57 }
 0x481   :  { %2003 = vst.msk [vmem:[%s3528_s7 + $0x78] sm:$0xff] %vm420_vm5, %v1926_v53  ;;  %v1925_v59 = vsel %vm1909_vm4, %v1901_v20, %v1917_v43 }
 0x482   :  { %2002 = vst.msk [vmem:[%s3528_s7 + $0x70] sm:$0xff] %vm420_vm5, %v1925_v59 }

</bundles_post_ra>
